<compile_context>
chip_gen: v5e
topology: v5e:2x2
jax: 0.10.0
libtpu: 0.0.40
codegen_flags: <defaults>
</compile_context>

<pallas_src>
import jax
import jax.numpy as jnp
from jax.experimental import pallas as pl
from jax.experimental.pallas import tpu as pltpu

LRELU_SLOPE = 0.2
BN_EPS = 1e-5
VMEM_LIMIT_BYTES = 32 * 1024 * 1024   # explicit headroom on all generations


# ---------------------------------------------------------------------------
# Pallas kernels
# ---------------------------------------------------------------------------
def _conv_bias_lrelu_kernel(wT_ref, b_ref, pT_ref, oT_ref):
    # wT:(C,K) f32 (tiny, resident), b:(C,1) f32, pT:(K,TM) bf16 -> oT:(C,TM) bf16.
    # bf16 is only a storage/HBM format; the contraction runs in f32.
    p = pT_ref[...].astype(jnp.float32)
    y = jnp.dot(wT_ref[...], p, preferred_element_type=jnp.float32) + b_ref[...]
    oT_ref[...] = jnp.where(y > 0, y, LRELU_SLOPE * y).astype(oT_ref.dtype)


def _conv_stats_kernel(wT_ref, pT_ref, yT_ref, s1_ref, s2_ref):
    # Conv (no bias) for one lane-dense M tile.  Per-tile partial channel
    # sum / sum-of-squares go to (1,C,1) blocks indexed by the grid step, so
    # the M axis stays "parallel"; partials are reduced in jnp afterwards.
    p = pT_ref[...].astype(jnp.float32)
    y = jnp.dot(wT_ref[...], p, preferred_element_type=jnp.float32)
    yT_ref[...] = y.astype(yT_ref.dtype)
    s1_ref[...] = jnp.sum(y, axis=1, keepdims=True)[None]
    s2_ref[...] = jnp.sum(y * y, axis=1, keepdims=True)[None]


# ---------------------------------------------------------------------------
# Glue
# ---------------------------------------------------------------------------
def _pick_tm(m_padded, target=1024):
    """Lane tile: multiple of 128 dividing m_padded, <= target, and giving
    >= 2 tiles whenever m_padded >= 256 (so both v7x TensorCores get work)."""
    if m_padded <= 128:
        return m_padded
    cap = min(target, m_padded // 2)
    cap = max((cap // 128) * 128, 128)
    for tm in range(cap, 127, -128):
        if m_padded % tm == 0:
            return tm
    return 128


def _im2col_T(x_act, k, stride, pad):
    # x_act: (C, N, H, W) channel-major, already activated.
    # Returns P^T of shape (K, M) with K-axis order (kh, kw, c_in), matching
    # w.reshape(k*k*C_in, C_out); M = N*Ho*Wo.
    # TODO(synk): fuse this patch extraction into the conv kernel.
    C, N, H, W = x_act.shape
    xp = jnp.pad(x_act, ((0, 0), (0, 0), (pad, pad), (pad, pad)))
    Ho = (H + 2 * pad - k) // stride + 1
    Wo = (W + 2 * pad - k) // stride + 1
    cols = []
    for kh in range(k):
        for kw in range(k):
            cols.append(
                xp[:, :, kh:kh + stride * Ho:stride, kw:kw + stride * Wo:stride])
    p = jnp.stack(cols, axis=0).reshape(k * k * C, N * Ho * Wo)
    return p, N, Ho, Wo


def _pad_m(pT):
    """Zero-pad the lane (M) axis up to a multiple of 128."""
    K, M = pT.shape
    Mp = ((M + 127) // 128) * 128
    if Mp != M:
        pT = jnp.pad(pT, ((0, 0), (0, Mp - M)))
    return pT, M, Mp


def _conv_bias_lrelu(x_act, w, b, stride, pad):
    k = w.shape[0]
    c_out = w.shape[-1]
    pT, N, Ho, Wo = _im2col_T(x_act, k, stride, pad)
    K = pT.shape[0]
    pT, M, Mp = _pad_m(pT)
    pT = pT.astype(jnp.bfloat16)
    wT = jnp.transpose(w.reshape(K, c_out)).astype(jnp.float32)    # (C,K), tiny
    b2 = b.reshape(c_out, 1).astype(jnp.float32)
    TM = _pick_tm(Mp)

    oT = pl.pallas_call(
        _conv_bias_lrelu_kernel,
        out_shape=jax.ShapeDtypeStruct((c_out, Mp), jnp.bfloat16),
        grid=(Mp // TM,),
        in_specs=[
            pl.BlockSpec((c_out, K), lambda i: (0, 0)),   # weight, resident
            pl.BlockSpec((c_out, 1), lambda i: (0, 0)),   # bias, resident
            pl.BlockSpec((K, TM), lambda i: (0, i)),      # patch tile (pipelined)
        ],
        out_specs=pl.BlockSpec((c_out, TM), lambda i: (0, i)),
        compiler_params=pltpu.CompilerParams(
            dimension_semantics=("parallel",),
            vmem_limit_bytes=VMEM_LIMIT_BYTES),
    )(wT, b2, pT)
    # Drop padded columns; keep channel-major activated bf16 feature map.
    return oT[:, :M].reshape(c_out, N, Ho, Wo)


def _conv_stats(x_act, w, stride, pad):
    """Conv (no bias) producing bf16 output + f32 channel sum / sum-of-squares."""
    k = w.shape[0]
    c_out = w.shape[-1]
    pT, N, Ho, Wo = _im2col_T(x_act, k, stride, pad)
    K = pT.shape[0]
    pT, M, Mp = _pad_m(pT)
    pT = pT.astype(jnp.bfloat16)
    wT = jnp.transpose(w.reshape(K, c_out)).astype(jnp.float32)
    TM = _pick_tm(Mp)
    nt = Mp // TM

    yT, ps1, ps2 = pl.pallas_call(
        _conv_stats_kernel,
        out_shape=(jax.ShapeDtypeStruct((c_out, Mp), jnp.bfloat16),
                   jax.ShapeDtypeStruct((nt, c_out, 1), jnp.float32),
                   jax.ShapeDtypeStruct((nt, c_out, 1), jnp.float32)),
        grid=(nt,),
        in_specs=[
            pl.BlockSpec((c_out, K), lambda i: (0, 0)),
            pl.BlockSpec((K, TM), lambda i: (0, i)),
        ],
        out_specs=(
            pl.BlockSpec((c_out, TM), lambda i: (0, i)),
            pl.BlockSpec((1, c_out, 1), lambda i: (i, 0, 0)),  # per-tile partial
            pl.BlockSpec((1, c_out, 1), lambda i: (i, 0, 0)),  # per-tile partial
        ),
        compiler_params=pltpu.CompilerParams(
            dimension_semantics=("parallel",),
            vmem_limit_bytes=VMEM_LIMIT_BYTES),
    )(wT, pT)

    # Padded columns are exactly zero -> contribute nothing to the sums.
    s1 = jnp.sum(ps1, axis=0)   # (C,1)
    s2 = jnp.sum(ps2, axis=0)   # (C,1)
    return yT, s1, s2, (c_out, N, Ho, Wo, M)


def _bn_fold(s1, s2, gamma, beta, m):
    # Training-mode BatchNorm (biased batch variance, eps=1e-5) folded into a
    # single per-channel affine.  E[y^2]-E[y]^2 is cancellation-prone; the
    # clamp keeps it non-negative (tighter parity would need a centered pass).
    mean = s1 / m
    var = jnp.maximum(s2 / m - mean * mean, 0.0)
    scale = gamma.reshape(-1, 1).astype(jnp.float32) * jax.lax.rsqrt(var + BN_EPS)
    shift = beta.reshape(-1, 1).astype(jnp.float32) - mean * scale
    return scale, shift


def _apply_bn_lrelu(yT, scale, shift, meta):
    # Deferred BN affine + LeakyReLU, applied in jnp right before the next
    # layer's im2col so XLA fuses it into the patch extraction (no extra HBM
    # pass, no extra pallas_call).  Applied BEFORE zero padding, so padded
    # positions stay exactly zero as in PyTorch.
    C, N, Ho, Wo, M = meta
    y = yT[:, :M].astype(jnp.float32) * scale + shift
    y = jnp.where(y > 0, y, LRELU_SLOPE * y)
    return y.reshape(C, N, Ho, Wo)


def _conv_final(x_act, w, b):
    # Final conv: C_out=1 and a single output pixel -> (1,K)@(K,N) matvec in
    # plain f32 jnp (Pallas launch overhead + 1-lane output exceed the work).
    k = w.shape[0]
    pT, N, Ho, Wo = _im2col_T(x_act.astype(jnp.float32), k, stride=2, pad=0)
    K = pT.shape[0]
    y = jnp.dot(w.reshape(K, 1).T, pT, preferred_element_type=jnp.float32)
    y = y + b.reshape(1, 1)
    return y.reshape(1, N, Ho, Wo)


# ---------------------------------------------------------------------------
# Parameter construction (deterministic, synthetic)
# ---------------------------------------------------------------------------
def init_params(key, channels_img, features_d):
    ks = jax.random.split(key, 8)
    fd = features_d

    def conv_w(k, cin, cout, scale=0.05):
        # Stored as (kH, kW, C_in, C_out); equivalent to PyTorch
        # (C_out, C_in, kH, kW).transpose(2, 3, 1, 0).
        return scale * jax.random.normal(k, (4, 4, cin, cout), jnp.float32)

    return {
        "w0": conv_w(ks[0], channels_img, fd),
        "b0": 0.01 * jax.random.normal(ks[1], (fd,), jnp.float32),
        "w1": conv_w(ks[2], fd, fd * 2),
        "g1": jnp.ones((fd * 2,), jnp.float32),
        "be1": jnp.zeros((fd * 2,), jnp.float32),
        "w2": conv_w(ks[3], fd * 2, fd * 4),
        "g2": jnp.ones((fd * 4,), jnp.float32),
        "be2": jnp.zeros((fd * 4,), jnp.float32),
        "w3": conv_w(ks[4], fd * 4, fd * 8),
        "g3": jnp.ones((fd * 8,), jnp.float32),
        "be3": jnp.zeros((fd * 8,), jnp.float32),
        "w4": conv_w(ks[5], fd * 8, 1),
        "b4": 0.01 * jax.random.normal(ks[6], (1,), jnp.float32),
    }


# ---------------------------------------------------------------------------
# Full forward pass
# ---------------------------------------------------------------------------
@jax.jit
def discriminator_forward(x_nchw, params):
    # x_nchw: (N, C, H, W) like PyTorch; internally channel-major (C, N, H, W).
    xT = jnp.transpose(x_nchw, (1, 0, 2, 3)).astype(jnp.float32)

    # Layer 0: conv + bias + LeakyReLU fused in-kernel. (fd, N, 32, 32) bf16
    a0 = _conv_bias_lrelu(xT, params["w0"], params["b0"], stride=2, pad=1)

    # Block 1: conv + batch stats; BN+LReLU deferred to block 2's im2col.
    y1, s1, s2, m1 = _conv_stats(a0, params["w1"], stride=2, pad=1)
    sc1, sh1 = _bn_fold(s1, s2, params["g1"], params["be1"], m1[-1])

    y2, s1, s2, m2 = _conv_stats(_apply_bn_lrelu(y1, sc1, sh1, m1),
                                 params["w2"], stride=2, pad=1)
    sc2, sh2 = _bn_fold(s1, s2, params["g2"], params["be2"], m2[-1])

    y3, s1, s2, m3 = _conv_stats(_apply_bn_lrelu(y2, sc2, sh2, m2),
                                 params["w3"], stride=2, pad=1)
    sc3, sh3 = _bn_fold(s1, s2, params["g3"], params["be3"], m3[-1])

    out = _conv_final(_apply_bn_lrelu(y3, sc3, sh3, m3),
                      params["w4"], params["b4"])          # (1, N, 1, 1)

    # Back to NCHW to match the PyTorch module's output layout.
    return jnp.transpose(out, (1, 0, 2, 3))                # (N, 1, 1, 1)


if __name__ == "__main__":
    key = jax.random.PRNGKey(0)
    k_x, k_p = jax.random.split(key)

    # Spatial 64 is implied by the architecture (final 4x4 conv, pad 0 -> 1x1).
    batch, channels_img, features_d, spatial = 2, 3, 8, 64
    x = jax.random.normal(k_x, (batch, channels_img, spatial, spatial), jnp.float32)
    params = init_params(k_p, channels_img, features_d)

    out = discriminator_forward(x, params)
    out = jax.block_until_ready(out)

    assert out.shape == (batch, 1, 1, 1), out.shape
    assert jnp.all(jnp.isfinite(out))
    print("KERNEL_OK")
</pallas_src>

<mosaic_0001>
module attributes {stable_mosaic.version = 11 : i64} {
  func.func @_conv_bias_lrelu_kernel(%arg0: i32, %arg1: memref<8x48xf32, #tpu.memory_space<vmem>>, %arg2: memref<8x1xf32, #tpu.memory_space<vmem>>, %arg3: memref<48x1024xbf16, #tpu.memory_space<vmem>>, %arg4: memref<8x1024xbf16, #tpu.memory_space<vmem>>) attributes {dimension_semantics = [#tpu.dimension_semantics<parallel>], iteration_bounds = array<i64: 2>, scalar_prefetch = 0 : i64, scratch_operands = 0 : i64, tpu.core_type = #tpu.core_type<tc>, window_params = [{pipeline_mode = #tpu.pipeline_mode<synchronous>, transform_indices = @transform_0, window_bounds = array<i64: 8, 48>}, {pipeline_mode = #tpu.pipeline_mode<synchronous>, transform_indices = @transform_1, window_bounds = array<i64: 8, 1>}, {transform_indices = @transform_2, window_bounds = array<i64: 48, 1024>}, {transform_indices = @transform_3, window_bounds = array<i64: 8, 1024>}]} {
    %c0 = arith.constant 0 : index
    %c0_0 = arith.constant 0 : index
    %0 = vector.load %arg3[%c0, %c0_0] : memref<48x1024xbf16, #tpu.memory_space<vmem>>, vector<48x1024xbf16>
    %1 = arith.extf %0 : vector<48x1024xbf16> to vector<48x1024xf32>
    %c0_1 = arith.constant 0 : index
    %c0_2 = arith.constant 0 : index
    %2 = vector.load %arg1[%c0_1, %c0_2] : memref<8x48xf32, #tpu.memory_space<vmem>>, vector<8x48xf32>
    %cst = arith.constant dense<0.000000e+00> : vector<8x1024xf32>
    %3 = tpu.matmul %2, %1, %cst {dimension_numbers = #tpu.dot_dimension_numbers<[1], [0], [0], [1], [0, 0, 1, 1], [], []>} : vector<8x48xf32>, vector<48x1024xf32>, vector<8x1024xf32> -> vector<8x1024xf32>
    %c0_3 = arith.constant 0 : index
    %c0_4 = arith.constant 0 : index
    %4 = vector.load %arg2[%c0_3, %c0_4] : memref<8x1xf32, #tpu.memory_space<vmem>>, vector<8x1xf32>
    %5 = vector.broadcast %4 : vector<8x1xf32> to vector<8x1024xf32>
    %6 = arith.addf %3, %5 : vector<8x1024xf32>
    %cst_5 = arith.constant 0.000000e+00 : f32
    %7 = vector.broadcast %cst_5 : f32 to vector<8x1024xf32>
    %8 = arith.cmpf ogt, %6, %7 : vector<8x1024xf32>
    %cst_6 = arith.constant 2.000000e-01 : f32
    %9 = vector.broadcast %cst_6 : f32 to vector<8x1024xf32>
    %10 = arith.mulf %9, %6 : vector<8x1024xf32>
    %11 = arith.select %8, %6, %10 : vector<8x1024xi1>, vector<8x1024xf32>
    %12 = arith.truncf %11 : vector<8x1024xf32> to vector<8x1024xbf16>
    %c0_7 = arith.constant 0 : index
    %c0_8 = arith.constant 0 : index
    %13 = vector.load %arg4[%c0_7, %c0_8] : memref<8x1024xbf16, #tpu.memory_space<vmem>>, vector<8x1024xbf16>
    tpu.vector_store %arg4[%c0_7, %c0_8], %12 {strides = array<i32>} : memref<8x1024xbf16, #tpu.memory_space<vmem>>, vector<8x1024xbf16>,
    return
  }
  func.func @transform_0(%arg0: i32) -> (i32, i32) {
    %c0_i32 = arith.constant 0 : i32
    %c0_i32_0 = arith.constant 0 : i32
    %c0_i32_1 = arith.constant 0 : i32
    return %c0_i32, %c0_i32_0 : i32, i32
  }
  func.func @transform_1(%arg0: i32) -> (i32, i32) {
    %c0_i32 = arith.constant 0 : i32
    %c0_i32_0 = arith.constant 0 : i32
    %c0_i32_1 = arith.constant 0 : i32
    return %c0_i32, %c0_i32_0 : i32, i32
  }
  func.func @transform_2(%arg0: i32) -> (i32, i32) {
    %c0_i32 = arith.constant 0 : i32
    %c0_i32_0 = arith.constant 0 : i32
    return %c0_i32, %arg0 : i32, i32
  }
  func.func @transform_3(%arg0: i32) -> (i32, i32) {
    %c0_i32 = arith.constant 0 : i32
    %c0_i32_0 = arith.constant 0 : i32
    return %c0_i32, %arg0 : i32, i32
  }
}

module attributes {stable_mosaic.version = 11 : i64} {
  func.func @_conv_stats_kernel(%arg0: i32, %arg1: memref<16x128xf32, #tpu.memory_space<vmem>>, %arg2: memref<128x256xbf16, #tpu.memory_space<vmem>>, %arg3: memref<16x256xbf16, #tpu.memory_space<vmem>>, %arg4: memref<1x16x1xf32, #tpu.memory_space<vmem>>, %arg5: memref<1x16x1xf32, #tpu.memory_space<vmem>>) attributes {dimension_semantics = [#tpu.dimension_semantics<parallel>], iteration_bounds = array<i64: 2>, scalar_prefetch = 0 : i64, scratch_operands = 0 : i64, tpu.core_type = #tpu.core_type<tc>, window_params = [{pipeline_mode = #tpu.pipeline_mode<synchronous>, transform_indices = @transform_0, window_bounds = array<i64: 16, 128>}, {transform_indices = @transform_1, window_bounds = array<i64: 128, 256>}, {transform_indices = @transform_2, window_bounds = array<i64: 16, 256>}, {transform_indices = @transform_3, window_bounds = array<i64: 1, 16, 1>}, {transform_indices = @transform_4, window_bounds = array<i64: 1, 16, 1>}]} {
    %c0 = arith.constant 0 : index
    %c0_0 = arith.constant 0 : index
    %0 = vector.load %arg2[%c0, %c0_0] : memref<128x256xbf16, #tpu.memory_space<vmem>>, vector<128x256xbf16>
    %1 = arith.extf %0 : vector<128x256xbf16> to vector<128x256xf32>
    %c0_1 = arith.constant 0 : index
    %c0_2 = arith.constant 0 : index
    %2 = vector.load %arg1[%c0_1, %c0_2] : memref<16x128xf32, #tpu.memory_space<vmem>>, vector<16x128xf32>
    %cst = arith.constant dense<0.000000e+00> : vector<16x256xf32>
    %3 = tpu.matmul %2, %1, %cst {dimension_numbers = #tpu.dot_dimension_numbers<[1], [0], [0], [1], [0, 0, 1, 1], [], []>} : vector<16x128xf32>, vector<128x256xf32>, vector<16x256xf32> -> vector<16x256xf32>
    %4 = arith.truncf %3 : vector<16x256xf32> to vector<16x256xbf16>
    %c0_3 = arith.constant 0 : index
    %c0_4 = arith.constant 0 : index
    %5 = vector.load %arg3[%c0_3, %c0_4] : memref<16x256xbf16, #tpu.memory_space<vmem>>, vector<16x256xbf16>
    tpu.vector_store %arg3[%c0_3, %c0_4], %4 {strides = array<i32>} : memref<16x256xbf16, #tpu.memory_space<vmem>>, vector<16x256xbf16>,
    %cst_5 = arith.constant dense<0.000000e+00> : vector<16xf32>
    %6 = vector.multi_reduction <add>, %3, %cst_5 [1] : vector<16x256xf32> to vector<16xf32>
    %7 = vector.shape_cast %6 : vector<16xf32> to vector<16x1xf32>
    %8 = vector.shape_cast %7 : vector<16x1xf32> to vector<1x16x1xf32>
    %c0_6 = arith.constant 0 : index
    %c0_7 = arith.constant 0 : index
    %c0_8 = arith.constant 0 : index
    %9 = vector.load %arg4[%c0_6, %c0_7, %c0_8] : memref<1x16x1xf32, #tpu.memory_space<vmem>>, vector<1x16x1xf32>
    tpu.vector_store %arg4[%c0_6, %c0_7, %c0_8], %8 {strides = array<i32>} : memref<1x16x1xf32, #tpu.memory_space<vmem>>, vector<1x16x1xf32>,
    %10 = arith.mulf %3, %3 : vector<16x256xf32>
    %cst_9 = arith.constant dense<0.000000e+00> : vector<16xf32>
    %11 = vector.multi_reduction <add>, %10, %cst_9 [1] : vector<16x256xf32> to vector<16xf32>
    %12 = vector.shape_cast %11 : vector<16xf32> to vector<16x1xf32>
    %13 = vector.shape_cast %12 : vector<16x1xf32> to vector<1x16x1xf32>
    %c0_10 = arith.constant 0 : index
    %c0_11 = arith.constant 0 : index
    %c0_12 = arith.constant 0 : index
    %14 = vector.load %arg5[%c0_10, %c0_11, %c0_12] : memref<1x16x1xf32, #tpu.memory_space<vmem>>, vector<1x16x1xf32>
    tpu.vector_store %arg5[%c0_10, %c0_11, %c0_12], %13 {strides = array<i32>} : memref<1x16x1xf32, #tpu.memory_space<vmem>>, vector<1x16x1xf32>,
    return
  }
  func.func @transform_0(%arg0: i32) -> (i32, i32) {
    %c0_i32 = arith.constant 0 : i32
    %c0_i32_0 = arith.constant 0 : i32
    %c0_i32_1 = arith.constant 0 : i32
    return %c0_i32, %c0_i32_0 : i32, i32
  }
  func.func @transform_1(%arg0: i32) -> (i32, i32) {
    %c0_i32 = arith.constant 0 : i32
    %c0_i32_0 = arith.constant 0 : i32
    return %c0_i32, %arg0 : i32, i32
  }
  func.func @transform_2(%arg0: i32) -> (i32, i32) {
    %c0_i32 = arith.constant 0 : i32
    %c0_i32_0 = arith.constant 0 : i32
    return %c0_i32, %arg0 : i32, i32
  }
  func.func @transform_3(%arg0: i32) -> (i32, i32, i32) {
    %c0_i32 = arith.constant 0 : i32
    %c0_i32_0 = arith.constant 0 : i32
    %c0_i32_1 = arith.constant 0 : i32
    return %arg0, %c0_i32, %c0_i32_0 : i32, i32, i32
  }
  func.func @transform_4(%arg0: i32) -> (i32, i32, i32) {
    %c0_i32 = arith.constant 0 : i32
    %c0_i32_0 = arith.constant 0 : i32
    %c0_i32_1 = arith.constant 0 : i32
    return %arg0, %c0_i32, %c0_i32_0 : i32, i32, i32
  }
}

module attributes {stable_mosaic.version = 11 : i64} {
  func.func @_conv_stats_kernel(%arg0: i32, %arg1: memref<32x256xf32, #tpu.memory_space<vmem>>, %arg2: memref<256x128xbf16, #tpu.memory_space<vmem>>, %arg3: memref<32x128xbf16, #tpu.memory_space<vmem>>, %arg4: memref<1x32x1xf32, #tpu.memory_space<vmem>>, %arg5: memref<1x32x1xf32, #tpu.memory_space<vmem>>) attributes {dimension_semantics = [#tpu.dimension_semantics<parallel>], iteration_bounds = array<i64: 1>, scalar_prefetch = 0 : i64, scratch_operands = 0 : i64, tpu.core_type = #tpu.core_type<tc>, window_params = [{pipeline_mode = #tpu.pipeline_mode<synchronous>, transform_indices = @transform_0, window_bounds = array<i64: 32, 256>}, {transform_indices = @transform_1, window_bounds = array<i64: 256, 128>}, {transform_indices = @transform_2, window_bounds = array<i64: 32, 128>}, {transform_indices = @transform_3, window_bounds = array<i64: 1, 32, 1>}, {transform_indices = @transform_4, window_bounds = array<i64: 1, 32, 1>}]} {
    %c0 = arith.constant 0 : index
    %c0_0 = arith.constant 0 : index
    %0 = vector.load %arg2[%c0, %c0_0] : memref<256x128xbf16, #tpu.memory_space<vmem>>, vector<256x128xbf16>
    %1 = arith.extf %0 : vector<256x128xbf16> to vector<256x128xf32>
    %c0_1 = arith.constant 0 : index
    %c0_2 = arith.constant 0 : index
    %2 = vector.load %arg1[%c0_1, %c0_2] : memref<32x256xf32, #tpu.memory_space<vmem>>, vector<32x256xf32>
    %cst = arith.constant dense<0.000000e+00> : vector<32x128xf32>
    %3 = tpu.matmul %2, %1, %cst {dimension_numbers = #tpu.dot_dimension_numbers<[1], [0], [0], [1], [0, 0, 1, 1], [], []>} : vector<32x256xf32>, vector<256x128xf32>, vector<32x128xf32> -> vector<32x128xf32>
    %4 = arith.truncf %3 : vector<32x128xf32> to vector<32x128xbf16>
    %c0_3 = arith.constant 0 : index
    %c0_4 = arith.constant 0 : index
    %5 = vector.load %arg3[%c0_3, %c0_4] : memref<32x128xbf16, #tpu.memory_space<vmem>>, vector<32x128xbf16>
    tpu.vector_store %arg3[%c0_3, %c0_4], %4 {strides = array<i32>} : memref<32x128xbf16, #tpu.memory_space<vmem>>, vector<32x128xbf16>,
    %cst_5 = arith.constant dense<0.000000e+00> : vector<32xf32>
    %6 = vector.multi_reduction <add>, %3, %cst_5 [1] : vector<32x128xf32> to vector<32xf32>
    %7 = vector.shape_cast %6 : vector<32xf32> to vector<32x1xf32>
    %8 = vector.shape_cast %7 : vector<32x1xf32> to vector<1x32x1xf32>
    %c0_6 = arith.constant 0 : index
    %c0_7 = arith.constant 0 : index
    %c0_8 = arith.constant 0 : index
    %9 = vector.load %arg4[%c0_6, %c0_7, %c0_8] : memref<1x32x1xf32, #tpu.memory_space<vmem>>, vector<1x32x1xf32>
    tpu.vector_store %arg4[%c0_6, %c0_7, %c0_8], %8 {strides = array<i32>} : memref<1x32x1xf32, #tpu.memory_space<vmem>>, vector<1x32x1xf32>,
    %10 = arith.mulf %3, %3 : vector<32x128xf32>
    %cst_9 = arith.constant dense<0.000000e+00> : vector<32xf32>
    %11 = vector.multi_reduction <add>, %10, %cst_9 [1] : vector<32x128xf32> to vector<32xf32>
    %12 = vector.shape_cast %11 : vector<32xf32> to vector<32x1xf32>
    %13 = vector.shape_cast %12 : vector<32x1xf32> to vector<1x32x1xf32>
    %c0_10 = arith.constant 0 : index
    %c0_11 = arith.constant 0 : index
    %c0_12 = arith.constant 0 : index
    %14 = vector.load %arg5[%c0_10, %c0_11, %c0_12] : memref<1x32x1xf32, #tpu.memory_space<vmem>>, vector<1x32x1xf32>
    tpu.vector_store %arg5[%c0_10, %c0_11, %c0_12], %13 {strides = array<i32>} : memref<1x32x1xf32, #tpu.memory_space<vmem>>, vector<1x32x1xf32>,
    return
  }
  func.func @transform_0(%arg0: i32) -> (i32, i32) {
    %c0_i32 = arith.constant 0 : i32
    %c0_i32_0 = arith.constant 0 : i32
    %c0_i32_1 = arith.constant 0 : i32
    return %c0_i32, %c0_i32_0 : i32, i32
  }
  func.func @transform_1(%arg0: i32) -> (i32, i32) {
    %c0_i32 = arith.constant 0 : i32
    %c0_i32_0 = arith.constant 0 : i32
    return %c0_i32, %arg0 : i32, i32
  }
  func.func @transform_2(%arg0: i32) -> (i32, i32) {
    %c0_i32 = arith.constant 0 : i32
    %c0_i32_0 = arith.constant 0 : i32
    return %c0_i32, %arg0 : i32, i32
  }
  func.func @transform_3(%arg0: i32) -> (i32, i32, i32) {
    %c0_i32 = arith.constant 0 : i32
    %c0_i32_0 = arith.constant 0 : i32
    %c0_i32_1 = arith.constant 0 : i32
    return %arg0, %c0_i32, %c0_i32_0 : i32, i32, i32
  }
  func.func @transform_4(%arg0: i32) -> (i32, i32, i32) {
    %c0_i32 = arith.constant 0 : i32
    %c0_i32_0 = arith.constant 0 : i32
    %c0_i32_1 = arith.constant 0 : i32
    return %arg0, %c0_i32, %c0_i32_0 : i32, i32, i32
  }
}

module attributes {stable_mosaic.version = 11 : i64} {
  func.func @_conv_stats_kernel(%arg0: i32, %arg1: memref<64x512xf32, #tpu.memory_space<vmem>>, %arg2: memref<512x128xbf16, #tpu.memory_space<vmem>>, %arg3: memref<64x128xbf16, #tpu.memory_space<vmem>>, %arg4: memref<1x64x1xf32, #tpu.memory_space<vmem>>, %arg5: memref<1x64x1xf32, #tpu.memory_space<vmem>>) attributes {dimension_semantics = [#tpu.dimension_semantics<parallel>], iteration_bounds = array<i64: 1>, scalar_prefetch = 0 : i64, scratch_operands = 0 : i64, tpu.core_type = #tpu.core_type<tc>, window_params = [{pipeline_mode = #tpu.pipeline_mode<synchronous>, transform_indices = @transform_0, window_bounds = array<i64: 64, 512>}, {transform_indices = @transform_1, window_bounds = array<i64: 512, 128>}, {transform_indices = @transform_2, window_bounds = array<i64: 64, 128>}, {transform_indices = @transform_3, window_bounds = array<i64: 1, 64, 1>}, {transform_indices = @transform_4, window_bounds = array<i64: 1, 64, 1>}]} {
    %c0 = arith.constant 0 : index
    %c0_0 = arith.constant 0 : index
    %0 = vector.load %arg2[%c0, %c0_0] : memref<512x128xbf16, #tpu.memory_space<vmem>>, vector<512x128xbf16>
    %1 = arith.extf %0 : vector<512x128xbf16> to vector<512x128xf32>
    %c0_1 = arith.constant 0 : index
    %c0_2 = arith.constant 0 : index
    %2 = vector.load %arg1[%c0_1, %c0_2] : memref<64x512xf32, #tpu.memory_space<vmem>>, vector<64x512xf32>
    %cst = arith.constant dense<0.000000e+00> : vector<64x128xf32>
    %3 = tpu.matmul %2, %1, %cst {dimension_numbers = #tpu.dot_dimension_numbers<[1], [0], [0], [1], [0, 0, 1, 1], [], []>} : vector<64x512xf32>, vector<512x128xf32>, vector<64x128xf32> -> vector<64x128xf32>
    %4 = arith.truncf %3 : vector<64x128xf32> to vector<64x128xbf16>
    %c0_3 = arith.constant 0 : index
    %c0_4 = arith.constant 0 : index
    %5 = vector.load %arg3[%c0_3, %c0_4] : memref<64x128xbf16, #tpu.memory_space<vmem>>, vector<64x128xbf16>
    tpu.vector_store %arg3[%c0_3, %c0_4], %4 {strides = array<i32>} : memref<64x128xbf16, #tpu.memory_space<vmem>>, vector<64x128xbf16>,
    %cst_5 = arith.constant dense<0.000000e+00> : vector<64xf32>
    %6 = vector.multi_reduction <add>, %3, %cst_5 [1] : vector<64x128xf32> to vector<64xf32>
    %7 = vector.shape_cast %6 : vector<64xf32> to vector<64x1xf32>
    %8 = vector.shape_cast %7 : vector<64x1xf32> to vector<1x64x1xf32>
    %c0_6 = arith.constant 0 : index
    %c0_7 = arith.constant 0 : index
    %c0_8 = arith.constant 0 : index
    %9 = vector.load %arg4[%c0_6, %c0_7, %c0_8] : memref<1x64x1xf32, #tpu.memory_space<vmem>>, vector<1x64x1xf32>
    tpu.vector_store %arg4[%c0_6, %c0_7, %c0_8], %8 {strides = array<i32>} : memref<1x64x1xf32, #tpu.memory_space<vmem>>, vector<1x64x1xf32>,
    %10 = arith.mulf %3, %3 : vector<64x128xf32>
    %cst_9 = arith.constant dense<0.000000e+00> : vector<64xf32>
    %11 = vector.multi_reduction <add>, %10, %cst_9 [1] : vector<64x128xf32> to vector<64xf32>
    %12 = vector.shape_cast %11 : vector<64xf32> to vector<64x1xf32>
    %13 = vector.shape_cast %12 : vector<64x1xf32> to vector<1x64x1xf32>
    %c0_10 = arith.constant 0 : index
    %c0_11 = arith.constant 0 : index
    %c0_12 = arith.constant 0 : index
    %14 = vector.load %arg5[%c0_10, %c0_11, %c0_12] : memref<1x64x1xf32, #tpu.memory_space<vmem>>, vector<1x64x1xf32>
    tpu.vector_store %arg5[%c0_10, %c0_11, %c0_12], %13 {strides = array<i32>} : memref<1x64x1xf32, #tpu.memory_space<vmem>>, vector<1x64x1xf32>,
    return
  }
  func.func @transform_0(%arg0: i32) -> (i32, i32) {
    %c0_i32 = arith.constant 0 : i32
    %c0_i32_0 = arith.constant 0 : i32
    %c0_i32_1 = arith.constant 0 : i32
    return %c0_i32, %c0_i32_0 : i32, i32
  }
  func.func @transform_1(%arg0: i32) -> (i32, i32) {
    %c0_i32 = arith.constant 0 : i32
    %c0_i32_0 = arith.constant 0 : i32
    return %c0_i32, %arg0 : i32, i32
  }
  func.func @transform_2(%arg0: i32) -> (i32, i32) {
    %c0_i32 = arith.constant 0 : i32
    %c0_i32_0 = arith.constant 0 : i32
    return %c0_i32, %arg0 : i32, i32
  }
  func.func @transform_3(%arg0: i32) -> (i32, i32, i32) {
    %c0_i32 = arith.constant 0 : i32
    %c0_i32_0 = arith.constant 0 : i32
    %c0_i32_1 = arith.constant 0 : i32
    return %arg0, %c0_i32, %c0_i32_0 : i32, i32, i32
  }
  func.func @transform_4(%arg0: i32) -> (i32, i32, i32) {
    %c0_i32 = arith.constant 0 : i32
    %c0_i32_0 = arith.constant 0 : i32
    %c0_i32_1 = arith.constant 0 : i32
    return %arg0, %c0_i32, %c0_i32_0 : i32, i32, i32
  }
}

</mosaic_0001>

<bundles_post_ra>
// kernel: discriminator_forward.4
= control target key start
LH: loop header
LB: loop body
LE: loop exit
PB: predicated region body
PF: predicated region fallthrough
CT: control target
= control target key end

     0   :  { %s669_s12 = smov 0   ;;  %s671_s13 = smov 0   ;;  %s829_s0 = inlined_call_operand.vmem [shape: f32[8,48], index: 0, kind: input, shape index: {}]   ;;  %s830_s1 = inlined_call_operand.vmem [shape: f32[8,1], index: 1, kind: input, shape index: {}]   ;;  %s831_s2 = inlined_call_operand.vmem [shape: bf16[48,2048], index: 2, kind: input, shape index: {}]   ;;  %s832_s3 = inlined_call_operand.vmem [shape: bf16[8,2048], index: 3, kind: output, shape index: {}]  }
   0x1   :  { %s673_s14 = smov 0  }
   0x2 LB: > { %s576_s15 = sadd.s32 4294967295, %s646_s14   ;;  %s686_s16 = sadd.s32 1, %s646_s14   ;;  %s646_s14 = sphi %s673_s14, %s835_s14   ;;  %s642_s13 = sphi %s671_s13, %s834_s13   ;;  %s638_s12 = sphi %s669_s12, %s833_s12  }
   0x3   : > { %s59_s17 = ssub.s32 %s646_s14, %s686_s16  ;;  %s62_s18 = sadd.s32 1, %s642_s13 }
   0x4   : > { %p60_p0 = scmp.eq.s32.totalorder %s59_s17, 0  ;;  %p69_p1 = scmp.ne.s32.totalorder %s642_s13, %s638_s12 }
   0x5   : > { %p70_p2 = scmp.eq.s32.totalorder %s646_s14, 0  ;;  %p579_p4 = scmp.ge.s32.totalorder %s646_s14, 2 }
   0x6   : > { %s695_s19 = scalar_select %p60_p0, %s642_s13, %s62_s18  }
   0x7   : > { %p71_p3 = por %p70_p2, %p69_p1  ;;  %127 = sbr.rel (%p579_p4) target bundleno = 40 (0x28), region = 24 }
   0xc   : > { %130 = sbr.rel (!%p71_p3) target bundleno = 40 (0x28), region = 28  ;;  %s132_s20 = sand.u32 (%p71_p3), 1, %s642_s13  }
   0xd   : > { %s595_s21 = sshll.u32 (%p71_p3), %s646_s14, 5  ;;  %s596_s22 = smul.u32 (%p71_p3), 192, %s132_s20 }
   0xe   : > { %s703_s25 = scalar_lea.vmem (%p71_p3), %s831_s2, %s595_s21 }
   0xf   : > { %v150_v0 = vld [vmem:[%s703_s25] sm:$0xff] (%p71_p3)  ;;  %v152_v1 = vld [vmem:[%s703_s25 + $0x8] sm:$0xff] (%p71_p3)  ;;  %v154_v2 = vld [vmem:[%s703_s25 + $0x10] sm:$0xff] (%p71_p3)  ;;  %s708_s26 = scalar_lea.vmem (%p71_p3), [#allocation2], %s596_s22 }
  0x10   : > { %151 = vst [vmem:[%s708_s26] sm:$0xff] (%p71_p3), %v150_v0  ;;  %v156_v3 = vld [vmem:[%s703_s25 + $0x18] sm:$0xff] (%p71_p3)  ;;  %v158_v4 = vld [vmem:[%s703_s25 + $0x40] sm:$0xff] (%p71_p3)  ;;  %v160_v5 = vld [vmem:[%s703_s25 + $0x48] sm:$0xff] (%p71_p3) }
  0x11   : > { %153 = vst [vmem:[%s708_s26 + $0x8] sm:$0xff] %v152_v1  ;;  %v162_v6 = vld [vmem:[%s703_s25 + $0x50] sm:$0xff]  ;;  %v164_v7 = vld [vmem:[%s703_s25 + $0x58] sm:$0xff]  ;;  %v166_v8 = vld [vmem:[%s703_s25 + $0x80] sm:$0xff] }
  0x12   : > { %155 = vst [vmem:[%s708_s26 + $0x10] sm:$0xff] %v154_v2  ;;  %v168_v9 = vld [vmem:[%s703_s25 + $0x88] sm:$0xff]  ;;  %v170_v10 = vld [vmem:[%s703_s25 + $0x90] sm:$0xff]  ;;  %v172_v11 = vld [vmem:[%s703_s25 + $0x98] sm:$0xff] }
  0x13   : > { %157 = vst [vmem:[%s708_s26 + $0x18] sm:$0xff] %v156_v3  ;;  %v174_v12 = vld [vmem:[%s703_s25 + $0xc0] sm:$0xff]  ;;  %v176_v13 = vld [vmem:[%s703_s25 + $0xc8] sm:$0xff]  ;;  %v178_v14 = vld [vmem:[%s703_s25 + $0xd0] sm:$0xff] }
  0x14   : > { %159 = vst [vmem:[%s708_s26 + $0x20] sm:$0xff] %v158_v4  ;;  %v180_v15 = vld [vmem:[%s703_s25 + $0xd8] sm:$0xff]  ;;  %v182_v16 = vld [vmem:[%s703_s25 + $0x100] sm:$0xff]  ;;  %v184_v17 = vld [vmem:[%s703_s25 + $0x108] sm:$0xff] }
  0x15   : > { %161 = vst [vmem:[%s708_s26 + $0x28] sm:$0xff] %v160_v5  ;;  %v186_v18 = vld [vmem:[%s703_s25 + $0x110] sm:$0xff]  ;;  %v188_v19 = vld [vmem:[%s703_s25 + $0x118] sm:$0xff]  ;;  %v190_v20 = vld [vmem:[%s703_s25 + $0x140] sm:$0xff] }
  0x16   : > { %163 = vst [vmem:[%s708_s26 + $0x30] sm:$0xff] %v162_v6  ;;  %v192_v21 = vld [vmem:[%s703_s25 + $0x148] sm:$0xff]  ;;  %v194_v22 = vld [vmem:[%s703_s25 + $0x150] sm:$0xff]  ;;  %v196_v23 = vld [vmem:[%s703_s25 + $0x158] sm:$0xff] }
  0x17   : > { %165 = vst [vmem:[%s708_s26 + $0x38] sm:$0xff] %v164_v7 }
  0x18   : > { %167 = vst [vmem:[%s708_s26 + $0x40] sm:$0xff] %v166_v8 }
  0x19   : > { %169 = vst [vmem:[%s708_s26 + $0x48] sm:$0xff] %v168_v9 }
  0x1a   : > { %171 = vst [vmem:[%s708_s26 + $0x50] sm:$0xff] %v170_v10 }
  0x1b   : > { %173 = vst [vmem:[%s708_s26 + $0x58] sm:$0xff] %v172_v11 }
  0x1c   : > { %175 = vst [vmem:[%s708_s26 + $0x60] sm:$0xff] %v174_v12 }
  0x1d   : > { %177 = vst [vmem:[%s708_s26 + $0x68] sm:$0xff] %v176_v13 }
  0x1e   : > { %179 = vst [vmem:[%s708_s26 + $0x70] sm:$0xff] %v178_v14 }
  0x1f   : > { %181 = vst [vmem:[%s708_s26 + $0x78] sm:$0xff] %v180_v15 }
  0x20   : > { %183 = vst [vmem:[%s708_s26 + $0x80] sm:$0xff] %v182_v16 }
  0x21   : > { %185 = vst [vmem:[%s708_s26 + $0x88] sm:$0xff] %v184_v17 }
  0x22   : > { %187 = vst [vmem:[%s708_s26 + $0x90] sm:$0xff] %v186_v18 }
  0x23   : > { %189 = vst [vmem:[%s708_s26 + $0x98] sm:$0xff] %v188_v19 }
  0x24   : > { %191 = vst [vmem:[%s708_s26 + $0xa0] sm:$0xff] %v190_v20 }
  0x25   : > { %193 = vst [vmem:[%s708_s26 + $0xa8] sm:$0xff] %v192_v21 }
  0x26   : > { %195 = vst [vmem:[%s708_s26 + $0xb0] sm:$0xff] %v194_v22 }
  0x27   : > { %197 = vst [vmem:[%s708_s26 + $0xb8] sm:$0xff] %v196_v23 }
  0x28 PF: > { %p582_p5 = scmp.ge.s32.totalorder %s646_s14, 1  ;;  %p202_p6 = scmp.lt.s32.totalorder %s646_s14, 3 }
  0x2a   : > { %p203_p7 = pnand %p582_p5, %p202_p6 }
  0x2b   : > { %s209_s27 = sand.u32 (!%p203_p7), 1, %s638_s12   ;;  %s583_s7 = sshll.u32 (!%p203_p7), %s576_s15, 3 }
  0x2c   : > { %206 = sbr.rel (%p203_p7) target bundleno = 218 (0xda), region = 51  ;;  %p234_p8 = scmp.lt.s32.totalorder (!%p203_p7), %s583_s7, 15 }
  0x2d   : > { %s597_s28 = smul.u32 (!%p203_p7), 192, %s209_s27 }
  0x2f   : > { %s761_s4 = scalar_lea.vmem (!%p203_p7), [#allocation2], %s597_s28 }
  0x31   : > { %v312_v24 = vld [vmem:[%s830_s1] sm:$0xff]  ;;  %v260_v25 = vld [vmem:[%s761_s4 + $0xa8] sm:$0xff]  ;;  %v648_v28 = vmov 0   ;;  %v262_v55 = vld [vmem:[%s761_s4 + $0xb8] sm:$0xff]  ;;  %vm318_vm0 = vcmask 392192   ;;  %s837_s7 = smov (!%p234_p8, %s583_s7), 15 }
  0x32   : > { %v256_v26 = vld [vmem:[%s761_s4 + $0x88] sm:$0xff]  ;;  %v259_v27 = vld [vmem:[%s761_s4 + $0xa0] sm:$0xff]  ;;  %623 = vset.pattern.permute.xlu0 %v648_v28  ;;  %v305_v29 = vunpack.c.l.bf16 %v260_v25  ;;  %v306_v30 = vunpack.c.h.bf16 %v260_v25  ;;  %v258_v60 = vld [vmem:[%s761_s4 + $0x98] sm:$0xff]  ;;  %v309_v61 = vunpack.c.l.bf16 %v262_v55  ;;  %v310_v62 = vunpack.c.h.bf16 %v262_v55  ;;  %s584_s8 = sshll.u32 %s837_s7, 2 }
  0x33   : > { %v297_v31 = vunpack.c.l.bf16 %v256_v26  ;;  %v298_v32 = vunpack.c.h.bf16 %v256_v26  ;;  %v252_v33 = vld [vmem:[%s761_s4 + $0x68] sm:$0xff]  ;;  %v255_v34 = vld [vmem:[%s761_s4 + $0x80] sm:$0xff]  ;;  %315 = vperm.xlu0 %623, %v312_v24   ;;  %v303_v35 = vunpack.c.l.bf16 %v259_v27  ;;  %v304_v36 = vunpack.c.h.bf16 %v259_v27  ;;  %v261_v0 = vld [vmem:[%s761_s4 + $0xb0] sm:$0xff]  ;;  %s813_s11 = scalar_lea.vmem %s832_s3, %s584_s8 }
  0x34   : > { %v248_v37 = vld [vmem:[%s761_s4 + $0x48] sm:$0xff]  ;;  %v251_v38 = vld [vmem:[%s761_s4 + $0x60] sm:$0xff]  ;;  %372 = vmatpush.msra.mxu2 %v305_v29  ;;  %392 = vmatpush.msra.mxu3 %v306_v30  ;;  %v289_v39 = vunpack.c.l.bf16 %v252_v33  ;;  %v290_v40 = vunpack.c.h.bf16 %v252_v33  ;;  %v295_v41 = vunpack.c.l.bf16 %v255_v34  ;;  %v296_v42 = vunpack.c.h.bf16 %v255_v34  ;;  %v254_v4 = vld [vmem:[%s761_s4 + $0x78] sm:$0xff] }
  0x35   : > { %v247_v43 = vld [vmem:[%s761_s4 + $0x40] sm:$0xff]  ;;  %332 = vmatpush.msra.mxu0 %v303_v35  ;;  %352 = vmatpush.msra.mxu1 %v304_v36  ;;  %v287_v44 = vunpack.c.l.bf16 %v251_v38  ;;  %v288_v45 = vunpack.c.h.bf16 %v251_v38  ;;  %v244_v46 = vld [vmem:[%s761_s4 + $0x28] sm:$0xff]  ;;  %v281_v47 = vunpack.c.l.bf16 %v248_v37  ;;  %v282_v48 = vunpack.c.h.bf16 %v248_v37  ;;  %v257_v7 = vld [vmem:[%s761_s4 + $0x90] sm:$0xff] }
  0x36   : > { %373 = vmatpush.msra.mxu2 %v297_v31  ;;  %393 = vmatpush.msra.mxu3 %v298_v32  ;;  %v243_v49 = vld [vmem:[%s761_s4 + $0x20] sm:$0xff]  ;;  %v279_v50 = vunpack.c.l.bf16 %v247_v43  ;;  %v280_v51 = vunpack.c.h.bf16 %v247_v43  ;;  %v240_v52 = vld [vmem:[%s761_s4 + $0x8] sm:$0xff]  ;;  %v273_v53 = vunpack.c.l.bf16 %v244_v46  ;;  %v274_v54 = vunpack.c.h.bf16 %v244_v46  ;;  %v250_v10 = vld [vmem:[%s761_s4 + $0x58] sm:$0xff] }
  0x37   : > { %333 = vmatpush.msra.mxu0 %v295_v41  ;;  %353 = vmatpush.msra.mxu1 %v296_v42  ;;  %v271_v56 = vunpack.c.l.bf16 %v243_v49  ;;  %v272_v57 = vunpack.c.h.bf16 %v243_v49  ;;  %v265_v58 = vunpack.c.l.bf16 %v240_v52  ;;  %v266_v59 = vunpack.c.h.bf16 %v240_v52  ;;  %v239_v63 = vld [vmem:[%s761_s4] sm:$0xff]  ;;  %v253_v15 = vld [vmem:[%s761_s4 + $0x70] sm:$0xff]  ;;  %v246_v18 = vld [vmem:[%s761_s4 + $0x38] sm:$0xff] }
  0x38   : > { %374 = vmatpush.msra.mxu2 %v289_v39  ;;  %394 = vmatpush.msra.mxu3 %v290_v40  ;;  %v781_v1 = vld [vmem:[%s829_s0] sm:$0xff]  ;;  %v301_v2 = vunpack.c.l.bf16 %v258_v60  ;;  %v302_v3 = vunpack.c.h.bf16 %v258_v60  ;;  %v263_v5 = vunpack.c.l.bf16 %v239_v63  ;;  %v264_v6 = vunpack.c.h.bf16 %v239_v63  ;;  %v249_v19 = vld [vmem:[%s761_s4 + $0x50] sm:$0xff]  ;;  %v242_v22 = vld [vmem:[%s761_s4 + $0x18] sm:$0xff] }
  0x39   : > { %334 = vmatpush.msra.mxu0 %v287_v44  ;;  %354 = vmatpush.msra.mxu1 %v288_v45  ;;  %v307_v8 = vunpack.c.l.bf16 %v261_v0  ;;  %v308_v9 = vunpack.c.h.bf16 %v261_v0  ;;  %v293_v11 = vunpack.c.l.bf16 %v254_v4  ;;  %v294_v12 = vunpack.c.h.bf16 %v254_v4  ;;  %v245_v27 = vld [vmem:[%s761_s4 + $0x30] sm:$0xff] }
  0x3a   : > { %375 = vmatpush.msra.mxu2 %v281_v47  ;;  %395 = vmatpush.msra.mxu3 %v282_v48  ;;  %v299_v13 = vunpack.c.l.bf16 %v257_v7  ;;  %v300_v14 = vunpack.c.h.bf16 %v257_v7  ;;  %v285_v16 = vunpack.c.l.bf16 %v250_v10  ;;  %v286_v17 = vunpack.c.h.bf16 %v250_v10  ;;  %v241_v30 = vld [vmem:[%s761_s4 + $0x10] sm:$0xff] }
  0x3b   : > { %335 = vmatpush.msra.mxu0 %v279_v50  ;;  %355 = vmatpush.msra.mxu1 %v280_v51  ;;  %v291_v20 = vunpack.c.l.bf16 %v253_v15  ;;  %v292_v21 = vunpack.c.h.bf16 %v253_v15  ;;  %v277_v23 = vunpack.c.l.bf16 %v246_v18  ;;  %v278_v24 = vunpack.c.h.bf16 %v246_v18 }
  0x3c   : > { %376 = vmatpush.msra.mxu2 %v273_v53  ;;  %396 = vmatpush.msra.mxu3 %v274_v54  ;;  %v283_v25 = vunpack.c.l.bf16 %v249_v19  ;;  %v284_v26 = vunpack.c.h.bf16 %v249_v19  ;;  %v269_v28 = vunpack.c.l.bf16 %v242_v22  ;;  %v270_v29 = vunpack.c.h.bf16 %v242_v22 }
  0x3d   : > { %336 = vmatpush.msra.mxu0 %v271_v56  ;;  %356 = vmatpush.msra.mxu1 %v272_v57  ;;  %v275_v31 = vunpack.c.l.bf16 %v245_v27  ;;  %v276_v32 = vunpack.c.h.bf16 %v245_v27  ;;  %v267_v33 = vunpack.c.l.bf16 %v241_v30  ;;  %v268_v34 = vunpack.c.h.bf16 %v241_v30 }
  0x3e   : > { %377 = vmatpush.msra.mxu2 %v265_v58  ;;  %397 = vmatpush.msra.mxu3 %v266_v59 }
  0x3f   : > { %587 = vmatmul.msk.f32.vlgmr.msra.gmra.mxu2 %vm318_vm0, %v781_v1  ;;  %588 = vmatmul.msk.f32.vlgmr.msra.gmra.mxu3 %vm318_vm0, %v781_v1 }
  0x40   : > { %452 = vmatpush.msrb.mxu2 %v309_v61  ;;  %472 = vmatpush.msrb.mxu3 %v310_v62 }
  0x41   : > { %337 = vmatpush.msra.mxu0 %v263_v5  ;;  %357 = vmatpush.msra.mxu1 %v264_v6 }
  0x42   : > { %453 = vmatpush.msrb.mxu2 %v301_v2  ;;  %473 = vmatpush.msrb.mxu3 %v302_v3 }
  0x43   : > { %412 = vmatpush.msrb.mxu0 %v307_v8  ;;  %432 = vmatpush.msrb.mxu1 %v308_v9 }
  0x44   : > { %454 = vmatpush.msrb.mxu2 %v293_v11  ;;  %474 = vmatpush.msrb.mxu3 %v294_v12 }
  0x45   : > { %413 = vmatpush.msrb.mxu0 %v299_v13  ;;  %433 = vmatpush.msrb.mxu1 %v300_v14 }
  0x46   : > { %455 = vmatpush.msrb.mxu2 %v285_v16  ;;  %475 = vmatpush.msrb.mxu3 %v286_v17 }
  0x47   : > { %585 = vmatmul.msk.f32.vlgmr.msra.gmra.mxu0 %vm318_vm0, %v781_v1  ;;  %586 = vmatmul.msk.f32.vlgmr.msra.gmra.mxu1 %vm318_vm0, %v781_v1 }
  0x48   : > { %414 = vmatpush.msrb.mxu0 %v291_v20  ;;  %434 = vmatpush.msrb.mxu1 %v292_v21 }
  0x49   : > { %456 = vmatpush.msrb.mxu2 %v277_v23  ;;  %476 = vmatpush.msrb.mxu3 %v278_v24 }
  0x4a   : > { %415 = vmatpush.msrb.mxu0 %v283_v25  ;;  %435 = vmatpush.msrb.mxu1 %v284_v26 }
  0x4b   : > { %457 = vmatpush.msrb.mxu2 %v269_v28  ;;  %477 = vmatpush.msrb.mxu3 %v270_v29 }
  0x4c   : > { %591 = vmatmul.msk.f32.vlgmr.msrb.gmra.mxu2 %vm318_vm0, %v781_v1  ;;  %592 = vmatmul.msk.f32.vlgmr.msrb.gmra.mxu3 %vm318_vm0, %v781_v1 }
  0x4d   : > { %416 = vmatpush.msrb.mxu0 %v275_v31  ;;  %436 = vmatpush.msrb.mxu1 %v276_v32 }
  0x4f   : > { %417 = vmatpush.msrb.mxu0 %v267_v33  ;;  %437 = vmatpush.msrb.mxu1 %v268_v34 }
  0x50   : > { %589 = vmatmul.msk.f32.vlgmr.msrb.gmra.mxu0 %vm318_vm0, %v781_v1  ;;  %590 = vmatmul.msk.f32.vlgmr.msrb.gmra.mxu1 %vm318_vm0, %v781_v1 }
  0xa5   : > { %v316_v35 = vpop.permute.xlu0 %315 }
  0xc2   : > { %v379_v36 = vpop.f32.mrf.mxu2  ;;  %v399_v37 = vpop.f32.mrf.mxu3 }
  0xc3   : > { %v380_v40 = vadd.f32 %v379_v36, %v316_v35  ;;  %v400_v41 = vadd.f32 %v399_v37, %v316_v35 }
  0xc4   : > { %v339_v38 = vpop.f32.mrf.mxu0  ;;  %v359_v39 = vpop.f32.mrf.mxu1 }
  0xc5   : > { %v340_v42 = vadd.f32 %v339_v38, %v316_v35  ;;  %v360_v43 = vadd.f32 %v359_v39, %v316_v35  ;;  %vm484_vm1 = vcmp.gt.f32.partialorder %v380_v40, 0.0  ;;  %v492_v44 = vmul.f32 0.2, %v380_v40 }
  0xc6   : > { %vm485_vm2 = vcmp.gt.f32.partialorder %v400_v41, 0.0  ;;  %v493_v45 = vmul.f32 0.2, %v400_v41 }
  0xc7   : > { %vm482_vm3 = vcmp.gt.f32.partialorder %v340_v42, 0.0  ;;  %v490_v46 = vmul.f32 0.2, %v340_v42  ;;  %vm483_vm4 = vcmp.gt.f32.partialorder %v360_v43, 0.0  ;;  %v491_v47 = vmul.f32 0.2, %v360_v43 }
  0xc8   : > { %v500_v48 = vsel %vm484_vm1, %v380_v40, %v492_v44  ;;  %v501_v49 = vsel %vm485_vm2, %v400_v41, %v493_v45 }
  0xc9   : > { %v498_v50 = vsel %vm482_vm3, %v340_v42, %v490_v46  ;;  %v499_v51 = vsel %vm483_vm4, %v360_v43, %v491_v47  ;;  %v507_v52 = vpack.c.bf16 %v501_v49, %v500_v48 }
  0xca   : > { %v506_v53 = vpack.c.bf16 %v499_v51, %v498_v50 }
  0xcb   : > { %511 = vst [vmem:[%s813_s11 + $0x8] sm:$0xff] %v507_v52 }
  0xcc   : > { %510 = vst [vmem:[%s813_s11] sm:$0xff] %v506_v53 }
  0xcd   : > { %v419_v54 = vpop.f32.mrf.mxu0  ;;  %v439_v55 = vpop.f32.mrf.mxu1 }
  0xce   : > { %v420_v56 = vadd.f32 %v419_v54, %v316_v35  ;;  %v440_v57 = vadd.f32 %v439_v55, %v316_v35 }
  0xcf   : > { %v459_v58 = vpop.f32.mrf.mxu2  ;;  %v479_v59 = vpop.f32.mrf.mxu3 }
  0xd0   : > { %vm486_vm5 = vcmp.gt.f32.partialorder %v420_v56, 0.0  ;;  %v494_v60 = vmul.f32 0.2, %v420_v56  ;;  %vm487_vm6 = vcmp.gt.f32.partialorder %v440_v57, 0.0  ;;  %v495_v61 = vmul.f32 0.2, %v440_v57 }
  0xd1   : > { %v460_v62 = vadd.f32 %v459_v58, %v316_v35  ;;  %v480_v63 = vadd.f32 %v479_v59, %v316_v35 }
  0xd2   : > { %v502_v0 = vsel %vm486_vm5, %v420_v56, %v494_v60  ;;  %v503_v1 = vsel %vm487_vm6, %v440_v57, %v495_v61 }
  0xd3   : > { %v508_v2 = vpack.c.bf16 %v503_v1, %v502_v0  ;;  %vm488_vm7 = vcmp.gt.f32.partialorder %v460_v62, 0.0  ;;  %v496_v3 = vmul.f32 0.2, %v460_v62  ;;  %vm489_vm8 = vcmp.gt.f32.partialorder %v480_v63, 0.0 }
  0xd4   : > { %v497_v4 = vmul.f32 0.2, %v480_v63 }
  0xd5   : > { %512 = vst [vmem:[%s813_s11 + $0x10] sm:$0xff] %v508_v2  ;;  %v504_v5 = vsel %vm488_vm7, %v460_v62, %v496_v3 }
  0xd6   : > { %v505_v6 = vsel %vm489_vm8, %v480_v63, %v497_v4 }
  0xd7   : > { %v509_v7 = vpack.c.bf16 %v505_v6, %v504_v5 }
  0xd9   : > { %513 = vst [vmem:[%s813_s11 + $0x18] sm:$0xff] %v509_v7 }
  0xda PF: > { %p10_p9 = scmp.ge.s32.totalorder %s686_s16, 4   ;;  %s833_s12 = smov %s642_s13 }
  0xdb   : > { %s834_s13 = smov %s695_s19  ;;  %s835_s14 = smov %s686_s16 }
  0xdc   :  { %12 = sbr.rel (!%p10_p9) target bundleno = 2 (0x2), region = 90 }

// kernel: discriminator_forward.5
= control target key start
LH: loop header
LB: loop body
LE: loop exit
PB: predicated region body
PF: predicated region fallthrough
CT: control target
= control target key end

     0   :  { %s733_s15 = smov 0   ;;  %s735_s16 = smov 0   ;;  %s853_s0 = inlined_call_operand.vmem [shape: f32[16,128], index: 0, kind: input, shape index: {}]   ;;  %s854_s1 = inlined_call_operand.vmem [shape: bf16[128,512], index: 1, kind: input, shape index: {}]   ;;  %s855_s2 = inlined_call_operand.vmem [shape: bf16[16,512], index: 2, kind: output, shape index: {0}]   ;;  %s856_s3 = inlined_call_operand.vmem [shape: f32[2,16,1], index: 3, kind: output, shape index: {1}]   ;;  %s857_s4 = inlined_call_operand.vmem [shape: f32[2,16,1], index: 4, kind: output, shape index: {2}]  }
   0x1   :  { %s737_s17 = smov 0  }
   0x2 LB: > { %s749_s18 = sadd.s32 4294967295, %s706_s17   ;;  %s752_s19 = sadd.s32 1, %s706_s17   ;;  %s706_s17 = sphi %s737_s17, %s861_s17   ;;  %s702_s16 = sphi %s735_s16, %s860_s16   ;;  %s698_s15 = sphi %s733_s15, %s859_s15  }
   0x3   : > { %s40_s20 = ssub.s32 %s706_s17, %s752_s19  ;;  %s43_s21 = sadd.s32 1, %s702_s16 }
   0x4   : > { %p41_p0 = scmp.eq.s32.totalorder %s40_s20, 0  ;;  %p50_p1 = scmp.ne.s32.totalorder %s702_s16, %s698_s15 }
   0x5   : > { %p51_p2 = scmp.eq.s32.totalorder %s706_s17, 0  ;;  %p80_p3 = scmp.eq.s32.totalorder %s749_s18, 1 }
   0x6   : > { %s762_s22 = scalar_select %p41_p0, %s702_s16, %s43_s21  }
   0x7   : > { %p52_p4 = por %p51_p2, %p50_p1  ;;  %p764_p5 = por %p80_p3, %p50_p1 }
   0x8   : > { %p608_p6 = scmp.ge.s32.totalorder %s706_s17, 2 }
   0xa   : > { %157 = sbr.rel (%p608_p6) target bundleno = 35 (0x23), region = 20 }
   0xf   : > { %160 = sbr.rel (!%p52_p4) target bundleno = 35 (0x23), region = 24  ;;  %s162_s24 = sand.u32 (%p52_p4), 1, %s702_s16  }
  0x10   : > { %s624_s25 = sshll.u32 (%p52_p4), %s706_s17, 3  ;;  %s609_s26 = sshll.u32 (%p52_p4), %s162_s24, 7 }
  0x11   : > { %s774_s29 = scalar_lea.vmem (%p52_p4), %s854_s1, %s624_s25  ;;  %s164_s30 = scalar_lea.vmem (%p52_p4), [#allocation2], %s609_s26 }
  0x12   : > { %v226_v0 = vld [vmem:[%s774_s29] sm:$0xff] (%p52_p4)  ;;  %v228_v1 = vld [vmem:[%s774_s29 + $0x10] sm:$0xff] (%p52_p4) }
  0x13   : > { %v230_v2 = vld [vmem:[%s774_s29 + $0x20] sm:$0xff] (%p52_p4)  ;;  %227 = vst [vmem:[%s164_s30] sm:$0xff] (%p52_p4), %v226_v0  ;;  %v232_v3 = vld [vmem:[%s774_s29 + $0x30] sm:$0xff] (%p52_p4) }
  0x14   : > { %229 = vst [vmem:[%s164_s30 + $0x8] sm:$0xff] %v228_v1  ;;  %v234_v4 = vld [vmem:[%s774_s29 + $0x40] sm:$0xff]  ;;  %v236_v5 = vld [vmem:[%s774_s29 + $0x50] sm:$0xff] }
  0x15   : > { %231 = vst [vmem:[%s164_s30 + $0x10] sm:$0xff] %v230_v2  ;;  %v238_v6 = vld [vmem:[%s774_s29 + $0x60] sm:$0xff]  ;;  %v240_v7 = vld [vmem:[%s774_s29 + $0x70] sm:$0xff] }
  0x16   : > { %233 = vst [vmem:[%s164_s30 + $0x18] sm:$0xff] %v232_v3  ;;  %v242_v8 = vld [vmem:[%s774_s29 + $0x80] sm:$0xff]  ;;  %v244_v9 = vld [vmem:[%s774_s29 + $0x90] sm:$0xff] }
  0x17   : > { %235 = vst [vmem:[%s164_s30 + $0x20] sm:$0xff] %v234_v4  ;;  %v246_v10 = vld [vmem:[%s774_s29 + $0xa0] sm:$0xff]  ;;  %v248_v11 = vld [vmem:[%s774_s29 + $0xb0] sm:$0xff] }
  0x18   : > { %237 = vst [vmem:[%s164_s30 + $0x28] sm:$0xff] %v236_v5  ;;  %v250_v12 = vld [vmem:[%s774_s29 + $0xc0] sm:$0xff]  ;;  %v252_v13 = vld [vmem:[%s774_s29 + $0xd0] sm:$0xff] }
  0x19   : > { %239 = vst [vmem:[%s164_s30 + $0x30] sm:$0xff] %v238_v6  ;;  %v254_v14 = vld [vmem:[%s774_s29 + $0xe0] sm:$0xff]  ;;  %v256_v15 = vld [vmem:[%s774_s29 + $0xf0] sm:$0xff] }
  0x1a   : > { %241 = vst [vmem:[%s164_s30 + $0x38] sm:$0xff] %v240_v7 }
  0x1b   : > { %243 = vst [vmem:[%s164_s30 + $0x40] sm:$0xff] %v242_v8 }
  0x1c   : > { %245 = vst [vmem:[%s164_s30 + $0x48] sm:$0xff] %v244_v9 }
  0x1d   : > { %247 = vst [vmem:[%s164_s30 + $0x50] sm:$0xff] %v246_v10 }
  0x1e   : > { %249 = vst [vmem:[%s164_s30 + $0x58] sm:$0xff] %v248_v11 }
  0x1f   : > { %251 = vst [vmem:[%s164_s30 + $0x60] sm:$0xff] %v250_v12 }
  0x20   : > { %253 = vst [vmem:[%s164_s30 + $0x68] sm:$0xff] %v252_v13 }
  0x21   : > { %255 = vst [vmem:[%s164_s30 + $0x70] sm:$0xff] %v254_v14 }
  0x22   : > { %257 = vst [vmem:[%s164_s30 + $0x78] sm:$0xff] %v256_v15 }
  0x23 PF: > { %p612_p7 = scmp.ge.s32.totalorder %s706_s17, 1  ;;  %p262_p8 = scmp.lt.s32.totalorder %s706_s17, 3 }
  0x25   : > { %p263_p9 = pnand %p612_p7, %p262_p8 }
  0x26   : > { %s269_s5 = sand.u32 (!%p263_p9), 1, %s698_s15   ;;  %p305_p10 = scmp.lt.s32.totalorder (!%p263_p9), %s749_s18, 1 }
  0x27   : > { %266 = sbr.rel (%p263_p9) target bundleno = 333 (0x14d), region = 62  ;;  %s613_s6 = sshll.u32 (!%p263_p9), %s269_s5, 7 }
  0x28   : > { %s797_s7 = scalar_lea.vmem (!%p263_p9), [#allocation2], %s613_s6  ;;  %s614_s12 = sshll.u32 (!%p263_p9), %s269_s5, 4 }
  0x29   : > { %s823_s13 = scalar_lea.vmem (!%p263_p9), [#allocation3], %s614_s12 }
  0x2c   : > { %v330_v16 = vld [vmem:[%s797_s7 + $0x78] sm:$0xff]  ;;  %v329_v17 = vld [vmem:[%s797_s7 + $0x70] sm:$0xff]  ;;  %v328_v18 = vld [vmem:[%s797_s7 + $0x68] sm:$0xff]  ;;  %s306_s14 = scalar_select %p305_p10, %s749_s18, 1  ;;  %vm421_vm0 = vcmask 7168  }
  0x2d   : > { %v361_v19 = vunpack.c.l.bf16 %v330_v16  ;;  %v362_v20 = vunpack.c.h.bf16 %v330_v16  ;;  %v359_v21 = vunpack.c.l.bf16 %v329_v17  ;;  %v360_v22 = vunpack.c.h.bf16 %v329_v17  ;;  %v327_v23 = vld [vmem:[%s797_s7 + $0x60] sm:$0xff]  ;;  %v326_v26 = vld [vmem:[%s797_s7 + $0x58] sm:$0xff]  ;;  %v325_v29 = vld [vmem:[%s797_s7 + $0x50] sm:$0xff]  ;;  %s627_s27 = sshll.u32 (%p764_p5), %s749_s18, 3 }
  0x2e   : > { %v357_v24 = vunpack.c.l.bf16 %v328_v18  ;;  %v358_v25 = vunpack.c.h.bf16 %v328_v18  ;;  %v355_v27 = vunpack.c.l.bf16 %v327_v23  ;;  %v356_v28 = vunpack.c.h.bf16 %v327_v23  ;;  %v324_v32 = vld [vmem:[%s797_s7 + $0x48] sm:$0xff]  ;;  %v323_v35 = vld [vmem:[%s797_s7 + $0x40] sm:$0xff]  ;;  %v322_v38 = vld [vmem:[%s797_s7 + $0x38] sm:$0xff]  ;;  %s625_s15 = sshll.u32 %s306_s14, 4  ;;  %s455_s30 = scalar_lea.vmem (%p764_p5), %s855_s2, %s627_s27 }
  0x2f   : > { %365 = vmatpush.msra.mxu0 %v361_v19  ;;  %388 = vmatpush.msra.mxu1 %v362_v20  ;;  %v353_v30 = vunpack.c.l.bf16 %v326_v26  ;;  %v354_v31 = vunpack.c.h.bf16 %v326_v26  ;;  %v351_v33 = vunpack.c.l.bf16 %v325_v29  ;;  %v352_v34 = vunpack.c.h.bf16 %v325_v29  ;;  %v321_v41 = vld [vmem:[%s797_s7 + $0x30] sm:$0xff]  ;;  %v320_v44 = vld [vmem:[%s797_s7 + $0x28] sm:$0xff]  ;;  %v319_v47 = vld [vmem:[%s797_s7 + $0x20] sm:$0xff]  ;;  %s309_s21 = scalar_lea.vmem %s856_s3, %s625_s15  ;;  %s314_s26 = scalar_lea.vmem %s857_s4, %s625_s15 }
  0x30   : > { %628 = vmatpush.msra.mxu2 %v361_v19  ;;  %644 = vmatpush.msra.mxu3 %v362_v20  ;;  %v349_v36 = vunpack.c.l.bf16 %v324_v32  ;;  %v350_v37 = vunpack.c.h.bf16 %v324_v32  ;;  %v347_v39 = vunpack.c.l.bf16 %v323_v35  ;;  %v348_v40 = vunpack.c.h.bf16 %v323_v35  ;;  %v318_v50 = vld [vmem:[%s797_s7 + $0x18] sm:$0xff]  ;;  %v317_v53 = vld [vmem:[%s797_s7 + $0x10] sm:$0xff]  ;;  %v316_v56 = vld [vmem:[%s797_s7 + $0x8] sm:$0xff] }
  0x31   : > { %366 = vmatpush.msra.mxu0 %v359_v21  ;;  %389 = vmatpush.msra.mxu1 %v360_v22  ;;  %v345_v42 = vunpack.c.l.bf16 %v322_v38  ;;  %v346_v43 = vunpack.c.h.bf16 %v322_v38  ;;  %v343_v45 = vunpack.c.l.bf16 %v321_v41  ;;  %v344_v46 = vunpack.c.h.bf16 %v321_v41  ;;  %v315_v59 = vld [vmem:[%s797_s7] sm:$0xff]  ;;  %v364_v1 = vld [vmem:[%s853_s0 + $0x8] sm:$0xff] }
  0x32   : > { %629 = vmatpush.msra.mxu2 %v359_v21  ;;  %645 = vmatpush.msra.mxu3 %v360_v22  ;;  %v341_v48 = vunpack.c.l.bf16 %v320_v44  ;;  %v342_v49 = vunpack.c.h.bf16 %v320_v44  ;;  %v339_v51 = vunpack.c.l.bf16 %v319_v47  ;;  %v340_v52 = vunpack.c.h.bf16 %v319_v47  ;;  %v363_v0 = vld [vmem:[%s853_s0] sm:$0xff] }
  0x33   : > { %367 = vmatpush.msra.mxu0 %v357_v24  ;;  %390 = vmatpush.msra.mxu1 %v358_v25  ;;  %v337_v54 = vunpack.c.l.bf16 %v318_v50  ;;  %v338_v55 = vunpack.c.h.bf16 %v318_v50  ;;  %v335_v57 = vunpack.c.l.bf16 %v317_v53  ;;  %v336_v58 = vunpack.c.h.bf16 %v317_v53 }
  0x34   : > { %630 = vmatpush.msra.mxu2 %v357_v24  ;;  %646 = vmatpush.msra.mxu3 %v358_v25  ;;  %v333_v60 = vunpack.c.l.bf16 %v316_v56  ;;  %v334_v61 = vunpack.c.h.bf16 %v316_v56  ;;  %v331_v62 = vunpack.c.l.bf16 %v315_v59  ;;  %v332_v63 = vunpack.c.h.bf16 %v315_v59 }
  0x35   : > { %368 = vmatpush.msra.mxu0 %v355_v27  ;;  %391 = vmatpush.msra.mxu1 %v356_v28 }
  0x36   : > { %631 = vmatpush.msra.mxu2 %v355_v27  ;;  %647 = vmatpush.msra.mxu3 %v356_v28 }
  0x37   : > { %369 = vmatpush.msra.mxu0 %v353_v30  ;;  %392 = vmatpush.msra.mxu1 %v354_v31 }
  0x38   : > { %632 = vmatpush.msra.mxu2 %v353_v30  ;;  %648 = vmatpush.msra.mxu3 %v354_v31 }
  0x39   : > { %370 = vmatpush.msra.mxu0 %v351_v33  ;;  %393 = vmatpush.msra.mxu1 %v352_v34 }
  0x3a   : > { %633 = vmatpush.msra.mxu2 %v351_v33  ;;  %649 = vmatpush.msra.mxu3 %v352_v34 }
  0x3b   : > { %371 = vmatpush.msra.mxu0 %v349_v36  ;;  %394 = vmatpush.msra.mxu1 %v350_v37 }
  0x3c   : > { %634 = vmatpush.msra.mxu2 %v349_v36  ;;  %650 = vmatpush.msra.mxu3 %v350_v37 }
  0x3d   : > { %372 = vmatpush.msra.mxu0 %v347_v39  ;;  %395 = vmatpush.msra.mxu1 %v348_v40 }
  0x3e   : > { %635 = vmatpush.msra.mxu2 %v347_v39  ;;  %651 = vmatpush.msra.mxu3 %v348_v40 }
  0x3f   : > { %373 = vmatpush.msra.mxu0 %v345_v42  ;;  %396 = vmatpush.msra.mxu1 %v346_v43 }
  0x40   : > { %636 = vmatpush.msra.mxu2 %v345_v42  ;;  %652 = vmatpush.msra.mxu3 %v346_v43 }
  0x41   : > { %374 = vmatpush.msra.mxu0 %v343_v45  ;;  %397 = vmatpush.msra.mxu1 %v344_v46 }
  0x42   : > { %637 = vmatpush.msra.mxu2 %v343_v45  ;;  %653 = vmatpush.msra.mxu3 %v344_v46 }
  0x43   : > { %375 = vmatpush.msra.mxu0 %v341_v48  ;;  %398 = vmatpush.msra.mxu1 %v342_v49 }
  0x44   : > { %638 = vmatpush.msra.mxu2 %v341_v48  ;;  %654 = vmatpush.msra.mxu3 %v342_v49 }
  0x45   : > { %376 = vmatpush.msra.mxu0 %v339_v51  ;;  %399 = vmatpush.msra.mxu1 %v340_v52 }
  0x46   : > { %639 = vmatpush.msra.mxu2 %v339_v51  ;;  %655 = vmatpush.msra.mxu3 %v340_v52 }
  0x47   : > { %377 = vmatpush.msra.mxu0 %v337_v54  ;;  %400 = vmatpush.msra.mxu1 %v338_v55 }
  0x48   : > { %640 = vmatpush.msra.mxu2 %v337_v54  ;;  %656 = vmatpush.msra.mxu3 %v338_v55 }
  0x49   : > { %378 = vmatpush.msra.mxu0 %v335_v57  ;;  %401 = vmatpush.msra.mxu1 %v336_v58 }
  0x4a   : > { %641 = vmatpush.msra.mxu2 %v335_v57  ;;  %657 = vmatpush.msra.mxu3 %v336_v58 }
  0x4b   : > { %379 = vmatpush.msra.mxu0 %v333_v60  ;;  %402 = vmatpush.msra.mxu1 %v334_v61 }
  0x4c   : > { %642 = vmatpush.msra.mxu2 %v333_v60  ;;  %658 = vmatpush.msra.mxu3 %v334_v61 }
  0x4d   : > { %380 = vmatpush.msra.mxu0 %v331_v62  ;;  %403 = vmatpush.msra.mxu1 %v332_v63 }
  0x4e   : > { %381 = vmatmul.f32.vlgmr.msra.gmra.mxu0 %v363_v0  ;;  %404 = vmatmul.f32.vlgmr.msra.gmra.mxu1 %v363_v0 }
  0x4f   : > { %643 = vmatpush.msra.mxu2 %v331_v62  ;;  %659 = vmatpush.msra.mxu3 %v332_v63 }
  0x50   : > { %384 = vmatmul.f32.vlgmr.msra.gmra.mxu2 %v364_v1  ;;  %407 = vmatmul.f32.vlgmr.msra.gmra.mxu3 %v364_v1 }
  0xcb   : > { %v382_v2 = vpop.f32.mrf.mxu0  ;;  %v405_v3 = vpop.f32.mrf.mxu1 }
  0xcc   : > { %v424_v4 = vmul.f32 %v382_v2, %v382_v2  ;;  %v411_v5 = vpack.c.bf16 %v405_v3, %v382_v2  ;;  %v425_v6 = vmul.f32 %v405_v3, %v405_v3  ;;  %v415_v7 = vadd.f32 %v405_v3, %v382_v2 }
  0xce   : > { %413 = vst [vmem:[%s823_s13] sm:$0xff] %v411_v5  ;;  %416 = vadd.xlane.f32.xlu0 %v415_v7  ;;  %v428_v8 = vadd.f32 %v425_v6, %v424_v4 }
  0xd0   : > { %429 = vadd.xlane.f32.xlu1 %v428_v8 }
  0xd3   : > { %v385_v9 = vpop.f32.mrf.mxu2  ;;  %v408_v10 = vpop.f32.mrf.mxu3 }
  0xd4   : > { %v426_v11 = vmul.f32 %v385_v9, %v385_v9  ;;  %v412_v12 = vpack.c.bf16 %v408_v10, %v385_v9  ;;  %v427_v13 = vmul.f32 %v408_v10, %v408_v10  ;;  %v418_v14 = vadd.f32 %v408_v10, %v385_v9 }
  0xd5   : > { %v486_v20 = vld [vmem:[%s823_s13] sm:$0xff] (%p764_p5) }
  0xd6   : > { %414 = vst [vmem:[%s823_s13 + $0x8] sm:$0xff] %v412_v12  ;;  %419 = vadd.xlane.f32.xlu0 %v418_v14  ;;  %v431_v15 = vadd.f32 %v427_v13, %v426_v11 }
  0xd7   : > { %487 = vst [vmem:[%s455_s30] sm:$0xff] (%p764_p5), %v486_v20 }
  0xd8   : > { %432 = vadd.xlane.f32.xlu1 %v431_v15 }
  0xdd   : > { %v488_v21 = vld [vmem:[%s823_s13 + $0x8] sm:$0xff] (%p764_p5) }
  0xde   : > { %489 = vst [vmem:[%s455_s30 + $0x10] sm:$0xff] (%p764_p5), %v488_v21 }
 0x141   : > { %v417_v16 = vpop.xlane.xlu0 %416 }
 0x142   : > { %422 = vst.msk [vmem:[%s309_s21] sm:$0xff] %vm421_vm0, %v417_v16 }
 0x143   : > { %v430_v17 = vpop.xlane.xlu1 %429 }
 0x144   : > { %434 = vst.msk [vmem:[%s314_s26] sm:$0xff] %vm421_vm0, %v430_v17 }
 0x148   : > { %452 = sbr.rel (!%p764_p5) target bundleno = 333 (0x14d), region = 70 }
 0x149   : > { %v420_v18 = vpop.xlane.xlu0 %419 }
 0x14a   : > { %423 = vst.msk [vmem:[%s309_s21 + $0x8] sm:$0xff] %vm421_vm0, %v420_v18 }
 0x14b   : > { %v433_v19 = vpop.xlane.xlu1 %432 }
 0x14c   : > { %435 = vst.msk [vmem:[%s314_s26 + $0x8] sm:$0xff] %vm421_vm0, %v433_v19 }
 0x14d PF: > { %p12_p11 = scmp.ge.s32.totalorder %s752_s19, 4   ;;  %s859_s15 = smov %s702_s16 }
 0x14e   : > { %s860_s16 = smov %s762_s22  ;;  %s861_s17 = smov %s752_s19 }
 0x14f   :  { %14 = sbr.rel (!%p12_p11) target bundleno = 2 (0x2), region = 163 }

// kernel: discriminator_forward.6
= control target key start
LH: loop header
LB: loop body
LE: loop exit
PB: predicated region body
PF: predicated region fallthrough
CT: control target
= control target key end

     0   :  { %vm160_vm0 = vcmask 7168   ;;  %s450_s1 = inlined_call_operand.vmem [shape: bf16[256,128], index: 1, kind: input, shape index: {}]   ;;  %s451_s0 = inlined_call_operand.vmem [shape: f32[32,256], index: 0, kind: input, shape index: {}]   ;;  %s452_s2 = inlined_call_operand.vmem [shape: bf16[32,128], index: 2, kind: output, shape index: {0}]   ;;  %s453_s3 = inlined_call_operand.vmem [shape: f32[1,32,1], index: 3, kind: output, shape index: {1}]   ;;  %s454_s4 = inlined_call_operand.vmem [shape: f32[1,32,1], index: 4, kind: output, shape index: {2}]  }
   0x1   :  { %v273_v0 = vld [vmem:[%s450_s1 + $0x38] sm:$0xff]   ;;  %v272_v2 = vld [vmem:[%s450_s1 + $0x30] sm:$0xff]   ;;  %v271_v10 = vld [vmem:[%s450_s1 + $0x28] sm:$0xff]  }
   0x2   :  { %v281_v1 = vld [vmem:[%s450_s1 + $0x78] sm:$0xff]   ;;  %v224_v3 = vunpack.c.h.bf16 %v273_v0  ;;  %v223_v5 = vunpack.c.l.bf16 %v273_v0  ;;  %v280_v6 = vld [vmem:[%s450_s1 + $0x70] sm:$0xff]   ;;  %v220_v8 = vunpack.c.h.bf16 %v272_v2  ;;  %v219_v11 = vunpack.c.l.bf16 %v272_v2  ;;  %v279_v12 = vld [vmem:[%s450_s1 + $0x68] sm:$0xff]  }
   0x3   :  { %v256_v4 = vunpack.c.h.bf16 %v281_v1  ;;  %v255_v7 = vunpack.c.l.bf16 %v281_v1  ;;  %v252_v9 = vunpack.c.h.bf16 %v280_v6  ;;  %v251_v13 = vunpack.c.l.bf16 %v280_v6  ;;  %v270_v16 = vld [vmem:[%s450_s1 + $0x20] sm:$0xff]   ;;  %v269_v22 = vld [vmem:[%s450_s1 + $0x18] sm:$0xff]   ;;  %v268_v28 = vld [vmem:[%s450_s1 + $0x10] sm:$0xff]  }
   0x4   :  { %86 = vmatpush.msra.mxu0 %v224_v3  ;;  %283 = vmatpush.msra.mxu2 %v224_v3  ;;  %v216_v14 = vunpack.c.h.bf16 %v271_v10  ;;  %v248_v15 = vunpack.c.h.bf16 %v279_v12  ;;  %v215_v17 = vunpack.c.l.bf16 %v271_v10  ;;  %v278_v18 = vld [vmem:[%s450_s1 + $0x60] sm:$0xff]   ;;  %v247_v19 = vunpack.c.l.bf16 %v279_v12  ;;  %v277_v24 = vld [vmem:[%s450_s1 + $0x58] sm:$0xff]   ;;  %v276_v30 = vld [vmem:[%s450_s1 + $0x50] sm:$0xff]  }
   0x5   :  { %115 = vmatpush.msra.mxu1 %v256_v4  ;;  %299 = vmatpush.msra.mxu3 %v256_v4  ;;  %v212_v20 = vunpack.c.h.bf16 %v270_v16  ;;  %v244_v21 = vunpack.c.h.bf16 %v278_v18  ;;  %v211_v23 = vunpack.c.l.bf16 %v270_v16  ;;  %v243_v25 = vunpack.c.l.bf16 %v278_v18  ;;  %v267_v34 = vld [vmem:[%s450_s1 + $0x8] sm:$0xff]   ;;  %v194_v40 = vld [vmem:[%s450_s1] sm:$0xff]   ;;  %v80_v52 = vld [vmem:[%s451_s0 + $0x10] sm:$0xff] }
   0x6   :  { %87 = vmatpush.msra.mxu0 %v223_v5  ;;  %284 = vmatpush.msra.mxu2 %v223_v5  ;;  %v208_v26 = vunpack.c.h.bf16 %v269_v22  ;;  %v240_v27 = vunpack.c.h.bf16 %v277_v24  ;;  %v207_v29 = vunpack.c.l.bf16 %v269_v22  ;;  %v239_v31 = vunpack.c.l.bf16 %v277_v24  ;;  %v275_v36 = vld [vmem:[%s450_s1 + $0x48] sm:$0xff]   ;;  %v274_v42 = vld [vmem:[%s450_s1 + $0x40] sm:$0xff]   ;;  %v84_v53 = vld [vmem:[%s451_s0 + $0x30] sm:$0xff] }
   0x7   :  { %116 = vmatpush.msra.mxu1 %v255_v7  ;;  %300 = vmatpush.msra.mxu3 %v255_v7  ;;  %v204_v32 = vunpack.c.h.bf16 %v268_v28  ;;  %v236_v33 = vunpack.c.h.bf16 %v276_v30  ;;  %v203_v35 = vunpack.c.l.bf16 %v268_v28  ;;  %v235_v37 = vunpack.c.l.bf16 %v276_v30  ;;  %v78_v48 = vld [vmem:[%s451_s0] sm:$0xff]  ;;  %v79_v50 = vld [vmem:[%s451_s0 + $0x8] sm:$0xff]  ;;  %v81_v54 = vld [vmem:[%s451_s0 + $0x18] sm:$0xff] }
   0x8   :  { %88 = vmatpush.msra.mxu0 %v220_v8  ;;  %285 = vmatpush.msra.mxu2 %v220_v8  ;;  %v200_v38 = vunpack.c.h.bf16 %v267_v34  ;;  %v232_v39 = vunpack.c.h.bf16 %v275_v36  ;;  %v199_v41 = vunpack.c.l.bf16 %v267_v34  ;;  %v231_v43 = vunpack.c.l.bf16 %v275_v36  ;;  %v82_v49 = vld [vmem:[%s451_s0 + $0x20] sm:$0xff]  ;;  %v83_v51 = vld [vmem:[%s451_s0 + $0x28] sm:$0xff]  ;;  %v85_v55 = vld [vmem:[%s451_s0 + $0x38] sm:$0xff] }
   0x9   :  { %117 = vmatpush.msra.mxu1 %v252_v9  ;;  %301 = vmatpush.msra.mxu3 %v252_v9  ;;  %v196_v44 = vunpack.c.h.bf16 %v194_v40  ;;  %v228_v45 = vunpack.c.h.bf16 %v274_v42  ;;  %v195_v46 = vunpack.c.l.bf16 %v194_v40  ;;  %v227_v47 = vunpack.c.l.bf16 %v274_v42 }
   0xa   :  { %89 = vmatpush.msra.mxu0 %v219_v11  ;;  %286 = vmatpush.msra.mxu2 %v219_v11 }
   0xb   :  { %118 = vmatpush.msra.mxu1 %v251_v13  ;;  %302 = vmatpush.msra.mxu3 %v251_v13 }
   0xc   :  { %90 = vmatpush.msra.mxu0 %v216_v14  ;;  %287 = vmatpush.msra.mxu2 %v216_v14 }
   0xd   :  { %119 = vmatpush.msra.mxu1 %v248_v15  ;;  %303 = vmatpush.msra.mxu3 %v248_v15 }
   0xe   :  { %91 = vmatpush.msra.mxu0 %v215_v17  ;;  %288 = vmatpush.msra.mxu2 %v215_v17 }
   0xf   :  { %120 = vmatpush.msra.mxu1 %v247_v19  ;;  %304 = vmatpush.msra.mxu3 %v247_v19 }
  0x10   :  { %92 = vmatpush.msra.mxu0 %v212_v20  ;;  %289 = vmatpush.msra.mxu2 %v212_v20 }
  0x11   :  { %121 = vmatpush.msra.mxu1 %v244_v21  ;;  %305 = vmatpush.msra.mxu3 %v244_v21 }
  0x12   :  { %93 = vmatpush.msra.mxu0 %v211_v23  ;;  %290 = vmatpush.msra.mxu2 %v211_v23 }
  0x13   :  { %122 = vmatpush.msra.mxu1 %v243_v25  ;;  %306 = vmatpush.msra.mxu3 %v243_v25 }
  0x14   :  { %94 = vmatpush.msra.mxu0 %v208_v26  ;;  %291 = vmatpush.msra.mxu2 %v208_v26 }
  0x15   :  { %123 = vmatpush.msra.mxu1 %v240_v27  ;;  %307 = vmatpush.msra.mxu3 %v240_v27 }
  0x16   :  { %95 = vmatpush.msra.mxu0 %v207_v29  ;;  %292 = vmatpush.msra.mxu2 %v207_v29 }
  0x17   :  { %124 = vmatpush.msra.mxu1 %v239_v31  ;;  %308 = vmatpush.msra.mxu3 %v239_v31 }
  0x18   :  { %96 = vmatpush.msra.mxu0 %v204_v32  ;;  %293 = vmatpush.msra.mxu2 %v204_v32 }
  0x19   :  { %125 = vmatpush.msra.mxu1 %v236_v33  ;;  %309 = vmatpush.msra.mxu3 %v236_v33 }
  0x1a   :  { %97 = vmatpush.msra.mxu0 %v203_v35  ;;  %294 = vmatpush.msra.mxu2 %v203_v35 }
  0x1b   :  { %126 = vmatpush.msra.mxu1 %v235_v37  ;;  %310 = vmatpush.msra.mxu3 %v235_v37 }
  0x1c   :  { %98 = vmatpush.msra.mxu0 %v200_v38  ;;  %295 = vmatpush.msra.mxu2 %v200_v38 }
  0x1d   :  { %127 = vmatpush.msra.mxu1 %v232_v39  ;;  %311 = vmatpush.msra.mxu3 %v232_v39 }
  0x1e   :  { %99 = vmatpush.msra.mxu0 %v199_v41  ;;  %296 = vmatpush.msra.mxu2 %v199_v41 }
  0x1f   :  { %128 = vmatpush.msra.mxu1 %v231_v43  ;;  %312 = vmatpush.msra.mxu3 %v231_v43 }
  0x20   :  { %100 = vmatpush.msra.mxu0 %v196_v44  ;;  %297 = vmatpush.msra.mxu2 %v196_v44 }
  0x21   :  { %129 = vmatpush.msra.mxu1 %v228_v45  ;;  %313 = vmatpush.msra.mxu3 %v228_v45 }
  0x22   :  { %101 = vmatpush.msra.mxu0 %v195_v46  ;;  %298 = vmatpush.msra.mxu2 %v195_v46 }
  0x23   :  { %130 = vmatpush.msra.mxu1 %v227_v47  ;;  %314 = vmatpush.msra.mxu3 %v227_v47 }
  0x24   :  { %102 = vmatmul.f32.vlgmr.msra.gmra.mxu0 %v78_v48  ;;  %108 = vmatmul.f32.vlgmr.msra.gmra.mxu2 %v82_v49 }
  0x25   :  { %131 = vmatmul.f32.vlgmr.msra.gmra.mxu1 %v79_v50  ;;  %137 = vmatmul.f32.vlgmr.msra.gmra.mxu3 %v83_v51 }
  0x2c   :  { %105 = vmatmul.f32.gmra.mxu0 %v80_v52  ;;  %111 = vmatmul.f32.gmra.mxu2 %v84_v53 }
  0x2d   :  { %134 = vmatmul.f32.gmra.mxu1 %v81_v54  ;;  %140 = vmatmul.f32.gmra.mxu3 %v85_v55 }
  0xa1   :  { %v103_v56 = vpop.f32.mrf.mxu0 }
  0xa2   :  { %v132_v57 = vpop.f32.mrf.mxu1 }
  0xa3   :  { %v133_v58 = vadd.f32 %v132_v57, %v103_v56 }
  0xa5   :  { %152 = vadd.xlane.f32.xlu0 %v133_v58  ;;  %v165_v59 = vmul.f32 %v133_v58, %v133_v58 }
  0xa7   :  { %v109_v60 = vpop.f32.mrf.mxu2  ;;  %169 = vadd.xlane.f32.xlu2 %v165_v59 }
  0xa8   :  { %v138_v61 = vpop.f32.mrf.mxu3 }
  0xa9   :  { %v139_v62 = vadd.f32 %v138_v61, %v109_v60  ;;  %v106_v63 = vpop.f32.mrf.mxu0 }
  0xaa   :  { %v135_v0 = vpop.f32.mrf.mxu1 }
  0xab   :  { %v136_v1 = vadd.f32 %v135_v0, %v106_v63  ;;  %156 = vadd.xlane.f32.xlu1 %v139_v62  ;;  %v167_v8 = vmul.f32 %v139_v62, %v139_v62 }
  0xad   :  { %v260_v2 = vpack.c.bf16 %v136_v1, %v133_v58  ;;  %154 = vadd.xlane.f32.xlu0 %v136_v1  ;;  %v166_v3 = vmul.f32 %v136_v1, %v136_v1 }
  0xaf   :  { %261 = vst [vmem:[%s452_s2] sm:$0xff] %v260_v2   ;;  %v112_v4 = vpop.f32.mrf.mxu2  ;;  %171 = vadd.xlane.f32.xlu2 %v166_v3 }
  0xb0   :  { %v141_v5 = vpop.f32.mrf.mxu3 }
  0xb1   :  { %v142_v6 = vadd.f32 %v141_v5, %v112_v4 }
  0xb3   :  { %v265_v7 = vpack.c.bf16 %v142_v6, %v139_v62  ;;  %158 = vadd.xlane.f32.xlu1 %v142_v6  ;;  %v168_v9 = vmul.f32 %v142_v6, %v142_v6 }
  0xb5   :  { %282 = vst [vmem:[%s452_s2 + $0x8] sm:$0xff] %v265_v7   ;;  %173 = vadd.xlane.f32.xlu0 %v167_v8 }
  0xbb   :  { %175 = vadd.xlane.f32.xlu1 %v168_v9 }
 0x118   :  { %v153_v10 = vpop.xlane.xlu0 %152 }
 0x119   :  { %161 = vst.msk [vmem:[%s453_s3] sm:$0xff] %vm160_vm0, %v153_v10 }
 0x11a   :  { %v170_v11 = vpop.xlane.xlu2 %169 }
 0x11b   :  { %177 = vst.msk [vmem:[%s454_s4] sm:$0xff] %vm160_vm0, %v170_v11 }
 0x11e   :  { %v157_v12 = vpop.xlane.xlu1 %156 }
 0x11f   :  { %163 = vst.msk [vmem:[%s453_s3 + $0x10] sm:$0xff] %vm160_vm0, %v157_v12 }
 0x120   :  { %v155_v13 = vpop.xlane.xlu0 %154 }
 0x121   :  { %162 = vst.msk [vmem:[%s453_s3 + $0x8] sm:$0xff] %vm160_vm0, %v155_v13 }
 0x122   :  { %v172_v14 = vpop.xlane.xlu2 %171 }
 0x123   :  { %178 = vst.msk [vmem:[%s454_s4 + $0x8] sm:$0xff] %vm160_vm0, %v172_v14 }
 0x126   :  { %v159_v15 = vpop.xlane.xlu1 %158 }
 0x127   :  { %164 = vst.msk [vmem:[%s453_s3 + $0x18] sm:$0xff] %vm160_vm0, %v159_v15 }
 0x128   :  { %v174_v16 = vpop.xlane.xlu0 %173 }
 0x129   :  { %179 = vst.msk [vmem:[%s454_s4 + $0x10] sm:$0xff] %vm160_vm0, %v174_v16 }
 0x12e   :  { %v176_v17 = vpop.xlane.xlu1 %175 }
 0x12f   :  { %180 = vst.msk [vmem:[%s454_s4 + $0x18] sm:$0xff] %vm160_vm0, %v176_v17 }

// kernel: discriminator_forward.7
= control target key start
LH: loop header
LB: loop body
LE: loop exit
PB: predicated region body
PF: predicated region fallthrough
CT: control target
= control target key end

     0   :  { %vm370_vm0 = vcmask 7168   ;;  %s898_s1 = inlined_call_operand.vmem [shape: bf16[512,128], index: 1, kind: input, shape index: {}]   ;;  %s899_s0 = inlined_call_operand.vmem [shape: f32[64,512], index: 0, kind: input, shape index: {}]   ;;  %s900_s2 = inlined_call_operand.vmem [shape: bf16[64,128], index: 2, kind: output, shape index: {0}]   ;;  %s901_s3 = inlined_call_operand.vmem [shape: f32[1,64,1], index: 3, kind: output, shape index: {1}]   ;;  %s902_s4 = inlined_call_operand.vmem [shape: f32[1,64,1], index: 4, kind: output, shape index: {2}]  }
   0x1   :  { %v593_v0 = vld [vmem:[%s898_s1 + $0xb8] sm:$0xff]   ;;  %v592_v8 = vld [vmem:[%s898_s1 + $0xb0] sm:$0xff]   ;;  %v591_v20 = vld [vmem:[%s898_s1 + $0xa8] sm:$0xff]  }
   0x2   :  { %v601_v1 = vld [vmem:[%s898_s1 + $0xf8] sm:$0xff]   ;;  %v518_v3 = vunpack.c.h.bf16 %v593_v0  ;;  %v517_v4 = vunpack.c.l.bf16 %v593_v0  ;;  %v600_v9 = vld [vmem:[%s898_s1 + $0xf0] sm:$0xff]   ;;  %v514_v15 = vunpack.c.h.bf16 %v592_v8  ;;  %v599_v21 = vld [vmem:[%s898_s1 + $0xe8] sm:$0xff]   ;;  %v513_v22 = vunpack.c.l.bf16 %v592_v8 }
   0x3   :  { %v577_v2 = vld [vmem:[%s898_s1 + $0x38] sm:$0xff]   ;;  %v550_v5 = vunpack.c.h.bf16 %v601_v1  ;;  %v549_v11 = vunpack.c.l.bf16 %v601_v1  ;;  %v576_v13 = vld [vmem:[%s898_s1 + $0x30] sm:$0xff]   ;;  %v546_v17 = vunpack.c.h.bf16 %v600_v9  ;;  %v545_v23 = vunpack.c.l.bf16 %v600_v9  ;;  %v575_v24 = vld [vmem:[%s898_s1 + $0x28] sm:$0xff]  }
   0x4   :  { %v454_v6 = vunpack.c.h.bf16 %v577_v2  ;;  %v585_v7 = vld [vmem:[%s898_s1 + $0x78] sm:$0xff]   ;;  %v453_v12 = vunpack.c.l.bf16 %v577_v2  ;;  %v584_v14 = vld [vmem:[%s898_s1 + $0x70] sm:$0xff]   ;;  %256 = vmatpush.msra.mxu2 %v518_v3  ;;  %v450_v18 = vunpack.c.h.bf16 %v576_v13  ;;  %v583_v25 = vld [vmem:[%s898_s1 + $0x68] sm:$0xff]   ;;  %v449_v26 = vunpack.c.l.bf16 %v576_v13 }
   0x5   :  { %v486_v10 = vunpack.c.h.bf16 %v585_v7  ;;  %297 = vmatpush.msra.mxu3 %v550_v5  ;;  %v485_v16 = vunpack.c.l.bf16 %v585_v7  ;;  %v482_v19 = vunpack.c.h.bf16 %v584_v14  ;;  %v481_v27 = vunpack.c.l.bf16 %v584_v14  ;;  %v590_v32 = vld [vmem:[%s898_s1 + $0xa0] sm:$0xff]   ;;  %v589_v44 = vld [vmem:[%s898_s1 + $0x98] sm:$0xff]   ;;  %v588_v56 = vld [vmem:[%s898_s1 + $0x90] sm:$0xff]  }
   0x6   :  { %174 = vmatpush.msra.mxu0 %v454_v6  ;;  %257 = vmatpush.msra.mxu2 %v517_v4  ;;  %v510_v28 = vunpack.c.h.bf16 %v591_v20  ;;  %v542_v29 = vunpack.c.h.bf16 %v599_v21  ;;  %v446_v30 = vunpack.c.h.bf16 %v575_v24  ;;  %v478_v31 = vunpack.c.h.bf16 %v583_v25  ;;  %v598_v33 = vld [vmem:[%s898_s1 + $0xe0] sm:$0xff]   ;;  %v597_v45 = vld [vmem:[%s898_s1 + $0xd8] sm:$0xff]   ;;  %v596_v57 = vld [vmem:[%s898_s1 + $0xd0] sm:$0xff]  }
   0x7   :  { %215 = vmatpush.msra.mxu1 %v486_v10  ;;  %298 = vmatpush.msra.mxu3 %v549_v11  ;;  %v509_v34 = vunpack.c.l.bf16 %v591_v20  ;;  %v541_v35 = vunpack.c.l.bf16 %v599_v21  ;;  %v574_v36 = vld [vmem:[%s898_s1 + $0x20] sm:$0xff]   ;;  %v445_v38 = vunpack.c.l.bf16 %v575_v24  ;;  %v477_v39 = vunpack.c.l.bf16 %v583_v25  ;;  %v573_v48 = vld [vmem:[%s898_s1 + $0x18] sm:$0xff]   ;;  %v572_v60 = vld [vmem:[%s898_s1 + $0x10] sm:$0xff]  }
   0x8   :  { %175 = vmatpush.msra.mxu0 %v453_v12  ;;  %258 = vmatpush.msra.mxu2 %v514_v15  ;;  %v582_v37 = vld [vmem:[%s898_s1 + $0x60] sm:$0xff]   ;;  %v506_v40 = vunpack.c.h.bf16 %v590_v32  ;;  %v538_v41 = vunpack.c.h.bf16 %v598_v33  ;;  %v442_v42 = vunpack.c.h.bf16 %v574_v36  ;;  %v505_v46 = vunpack.c.l.bf16 %v590_v32  ;;  %v581_v49 = vld [vmem:[%s898_s1 + $0x58] sm:$0xff]   ;;  %v580_v61 = vld [vmem:[%s898_s1 + $0x50] sm:$0xff]  }
   0x9   :  { %216 = vmatpush.msra.mxu1 %v485_v16  ;;  %299 = vmatpush.msra.mxu3 %v546_v17  ;;  %v474_v43 = vunpack.c.h.bf16 %v582_v37  ;;  %v537_v47 = vunpack.c.l.bf16 %v598_v33  ;;  %v441_v50 = vunpack.c.l.bf16 %v574_v36  ;;  %v473_v51 = vunpack.c.l.bf16 %v582_v37  ;;  %v587_v4 = vld [vmem:[%s898_s1 + $0x88] sm:$0xff]   ;;  %v586_v16 = vld [vmem:[%s898_s1 + $0x80] sm:$0xff]   ;;  %v148_v36 = vld [vmem:[%s899_s0 + $0x30] sm:$0xff] }
   0xa   :  { %176 = vmatpush.msra.mxu0 %v450_v18  ;;  %259 = vmatpush.msra.mxu2 %v513_v22  ;;  %v502_v52 = vunpack.c.h.bf16 %v589_v44  ;;  %v534_v53 = vunpack.c.h.bf16 %v597_v45  ;;  %v438_v54 = vunpack.c.h.bf16 %v573_v48  ;;  %v470_v55 = vunpack.c.h.bf16 %v581_v49  ;;  %v595_v5 = vld [vmem:[%s898_s1 + $0xc8] sm:$0xff]   ;;  %v594_v17 = vld [vmem:[%s898_s1 + $0xc0] sm:$0xff]   ;;  %v149_v37 = vld [vmem:[%s899_s0 + $0x38] sm:$0xff] }
   0xb   :  { %217 = vmatpush.msra.mxu1 %v482_v19  ;;  %300 = vmatpush.msra.mxu3 %v545_v23  ;;  %v501_v58 = vunpack.c.l.bf16 %v589_v44  ;;  %v533_v59 = vunpack.c.l.bf16 %v597_v45  ;;  %v437_v62 = vunpack.c.l.bf16 %v573_v48  ;;  %v469_v63 = vunpack.c.l.bf16 %v581_v49  ;;  %v571_v8 = vld [vmem:[%s898_s1 + $0x8] sm:$0xff]   ;;  %v424_v20 = vld [vmem:[%s898_s1] sm:$0xff]   ;;  %v156_v44 = vld [vmem:[%s899_s0 + $0x70] sm:$0xff] }
   0xc   :  { %177 = vmatpush.msra.mxu0 %v449_v26  ;;  %260 = vmatpush.msra.mxu2 %v510_v28  ;;  %v498_v0 = vunpack.c.h.bf16 %v588_v56  ;;  %v530_v1 = vunpack.c.h.bf16 %v596_v57  ;;  %v434_v2 = vunpack.c.h.bf16 %v572_v60  ;;  %v466_v3 = vunpack.c.h.bf16 %v580_v61  ;;  %v579_v9 = vld [vmem:[%s898_s1 + $0x48] sm:$0xff]   ;;  %v578_v21 = vld [vmem:[%s898_s1 + $0x40] sm:$0xff]   ;;  %v157_v45 = vld [vmem:[%s899_s0 + $0x78] sm:$0xff] }
   0xd   :  { %218 = vmatpush.msra.mxu1 %v481_v27  ;;  %301 = vmatpush.msra.mxu3 %v542_v29  ;;  %v497_v6 = vunpack.c.l.bf16 %v588_v56  ;;  %v529_v7 = vunpack.c.l.bf16 %v596_v57  ;;  %v433_v10 = vunpack.c.l.bf16 %v572_v60  ;;  %v465_v11 = vunpack.c.l.bf16 %v580_v61  ;;  %v160_v48 = vld [vmem:[%s899_s0 + $0x90] sm:$0xff]  ;;  %v161_v49 = vld [vmem:[%s899_s0 + $0x98] sm:$0xff] }
   0xe   :  { %178 = vmatpush.msra.mxu0 %v446_v30  ;;  %261 = vmatpush.msra.mxu2 %v509_v34  ;;  %v494_v12 = vunpack.c.h.bf16 %v587_v4  ;;  %v526_v13 = vunpack.c.h.bf16 %v595_v5  ;;  %v430_v14 = vunpack.c.h.bf16 %v571_v8  ;;  %v462_v15 = vunpack.c.h.bf16 %v579_v9  ;;  %v144_v30 = vld [vmem:[%s899_s0 + $0x10] sm:$0xff]  ;;  %v142_v34 = vld [vmem:[%s899_s0] sm:$0xff]  ;;  %v169_v57 = vld [vmem:[%s899_s0 + $0xd8] sm:$0xff] }
   0xf   :  { %219 = vmatpush.msra.mxu1 %v478_v31  ;;  %302 = vmatpush.msra.mxu3 %v541_v35  ;;  %v493_v18 = vunpack.c.l.bf16 %v587_v4  ;;  %v525_v19 = vunpack.c.l.bf16 %v595_v5  ;;  %v429_v22 = vunpack.c.l.bf16 %v571_v8  ;;  %v461_v23 = vunpack.c.l.bf16 %v579_v9  ;;  %v145_v31 = vld [vmem:[%s899_s0 + $0x18] sm:$0xff]  ;;  %v143_v35 = vld [vmem:[%s899_s0 + $0x8] sm:$0xff]  ;;  %v168_v56 = vld [vmem:[%s899_s0 + $0xd0] sm:$0xff] }
  0x10   :  { %179 = vmatpush.msra.mxu0 %v445_v38  ;;  %262 = vmatpush.msra.mxu2 %v506_v40  ;;  %v490_v24 = vunpack.c.h.bf16 %v586_v16  ;;  %v522_v25 = vunpack.c.h.bf16 %v594_v17  ;;  %v426_v26 = vunpack.c.h.bf16 %v424_v20  ;;  %v458_v27 = vunpack.c.h.bf16 %v578_v21  ;;  %v146_v38 = vld [vmem:[%s899_s0 + $0x20] sm:$0xff]  ;;  %v152_v40 = vld [vmem:[%s899_s0 + $0x50] sm:$0xff]  ;;  %v173_v61 = vld [vmem:[%s899_s0 + $0xf8] sm:$0xff] }
  0x11   :  { %220 = vmatpush.msra.mxu1 %v477_v39  ;;  %303 = vmatpush.msra.mxu3 %v538_v41  ;;  %v489_v28 = vunpack.c.l.bf16 %v586_v16  ;;  %v521_v29 = vunpack.c.l.bf16 %v594_v17  ;;  %v425_v32 = vunpack.c.l.bf16 %v424_v20  ;;  %v457_v33 = vunpack.c.l.bf16 %v578_v21  ;;  %v147_v39 = vld [vmem:[%s899_s0 + $0x28] sm:$0xff]  ;;  %v153_v41 = vld [vmem:[%s899_s0 + $0x58] sm:$0xff]  ;;  %v172_v60 = vld [vmem:[%s899_s0 + $0xf0] sm:$0xff] }
  0x12   :  { %180 = vmatpush.msra.mxu0 %v442_v42  ;;  %263 = vmatpush.msra.mxu2 %v505_v46  ;;  %v150_v42 = vld [vmem:[%s899_s0 + $0x40] sm:$0xff] }
  0x13   :  { %221 = vmatpush.msra.mxu1 %v474_v43  ;;  %304 = vmatpush.msra.mxu3 %v537_v47  ;;  %v151_v43 = vld [vmem:[%s899_s0 + $0x48] sm:$0xff]  ;;  %v154_v46 = vld [vmem:[%s899_s0 + $0x60] sm:$0xff] }
  0x14   :  { %181 = vmatpush.msra.mxu0 %v441_v50  ;;  %264 = vmatpush.msra.mxu2 %v502_v52  ;;  %v155_v47 = vld [vmem:[%s899_s0 + $0x68] sm:$0xff]  ;;  %v158_v50 = vld [vmem:[%s899_s0 + $0x80] sm:$0xff]  ;;  %v164_v52 = vld [vmem:[%s899_s0 + $0xb0] sm:$0xff] }
  0x15   :  { %222 = vmatpush.msra.mxu1 %v473_v51  ;;  %305 = vmatpush.msra.mxu3 %v534_v53  ;;  %v159_v51 = vld [vmem:[%s899_s0 + $0x88] sm:$0xff]  ;;  %v165_v53 = vld [vmem:[%s899_s0 + $0xb8] sm:$0xff] }
  0x16   :  { %182 = vmatpush.msra.mxu0 %v438_v54  ;;  %265 = vmatpush.msra.mxu2 %v501_v58  ;;  %v162_v54 = vld [vmem:[%s899_s0 + $0xa0] sm:$0xff] }
  0x17   :  { %223 = vmatpush.msra.mxu1 %v470_v55  ;;  %306 = vmatpush.msra.mxu3 %v533_v59  ;;  %v163_v55 = vld [vmem:[%s899_s0 + $0xa8] sm:$0xff]  ;;  %v166_v58 = vld [vmem:[%s899_s0 + $0xc0] sm:$0xff] }
  0x18   :  { %183 = vmatpush.msra.mxu0 %v437_v62  ;;  %266 = vmatpush.msra.mxu2 %v498_v0  ;;  %v167_v59 = vld [vmem:[%s899_s0 + $0xc8] sm:$0xff]  ;;  %v170_v62 = vld [vmem:[%s899_s0 + $0xe0] sm:$0xff] }
  0x19   :  { %224 = vmatpush.msra.mxu1 %v469_v63  ;;  %307 = vmatpush.msra.mxu3 %v530_v1  ;;  %v171_v63 = vld [vmem:[%s899_s0 + $0xe8] sm:$0xff] }
  0x1a   :  { %184 = vmatpush.msra.mxu0 %v434_v2  ;;  %267 = vmatpush.msra.mxu2 %v497_v6 }
  0x1b   :  { %225 = vmatpush.msra.mxu1 %v466_v3  ;;  %308 = vmatpush.msra.mxu3 %v529_v7 }
  0x1c   :  { %185 = vmatpush.msra.mxu0 %v433_v10  ;;  %268 = vmatpush.msra.mxu2 %v494_v12 }
  0x1d   :  { %226 = vmatpush.msra.mxu1 %v465_v11  ;;  %309 = vmatpush.msra.mxu3 %v526_v13 }
  0x1e   :  { %186 = vmatpush.msra.mxu0 %v430_v14  ;;  %269 = vmatpush.msra.mxu2 %v493_v18 }
  0x1f   :  { %227 = vmatpush.msra.mxu1 %v462_v15  ;;  %310 = vmatpush.msra.mxu3 %v525_v19 }
  0x20   :  { %187 = vmatpush.msra.mxu0 %v429_v22  ;;  %270 = vmatpush.msra.mxu2 %v490_v24 }
  0x21   :  { %228 = vmatpush.msra.mxu1 %v461_v23  ;;  %311 = vmatpush.msra.mxu3 %v522_v25 }
  0x22   :  { %188 = vmatpush.msra.mxu0 %v426_v26  ;;  %271 = vmatpush.msra.mxu2 %v489_v28 }
  0x23   :  { %229 = vmatpush.msra.mxu1 %v458_v27  ;;  %312 = vmatpush.msra.mxu3 %v521_v29 }
  0x24   :  { %272 = vmatmul.f32.vlgmr.msra.gmra.mxu2 %v144_v30  ;;  %313 = vmatmul.f32.vlgmr.msra.gmra.mxu3 %v145_v31 }
  0x25   :  { %189 = vmatpush.msra.mxu0 %v425_v32  ;;  %230 = vmatpush.msra.mxu1 %v457_v33 }
  0x26   :  { %190 = vmatmul.f32.vlgmr.msra.gmra.mxu0 %v142_v34  ;;  %231 = vmatmul.f32.vlgmr.msra.gmra.mxu1 %v143_v35 }
  0x2c   :  { %275 = vmatmul.f32.gmra.mxu2 %v148_v36  ;;  %316 = vmatmul.f32.gmra.mxu3 %v149_v37 }
  0x2e   :  { %193 = vmatmul.f32.gmra.mxu0 %v146_v38  ;;  %234 = vmatmul.f32.gmra.mxu1 %v147_v39 }
  0x34   :  { %278 = vmatmul.f32.gmra.mxu2 %v152_v40  ;;  %319 = vmatmul.f32.gmra.mxu3 %v153_v41 }
  0x36   :  { %196 = vmatmul.f32.gmra.mxu0 %v150_v42  ;;  %237 = vmatmul.f32.gmra.mxu1 %v151_v43 }
  0x3c   :  { %281 = vmatmul.f32.gmra.mxu2 %v156_v44  ;;  %322 = vmatmul.f32.gmra.mxu3 %v157_v45 }
  0x3e   :  { %199 = vmatmul.f32.gmra.mxu0 %v154_v46  ;;  %240 = vmatmul.f32.gmra.mxu1 %v155_v47 }
  0x44   :  { %284 = vmatmul.f32.gmra.mxu2 %v160_v48  ;;  %325 = vmatmul.f32.gmra.mxu3 %v161_v49 }
  0x46   :  { %202 = vmatmul.f32.gmra.mxu0 %v158_v50  ;;  %243 = vmatmul.f32.gmra.mxu1 %v159_v51 }
  0x4c   :  { %287 = vmatmul.f32.gmra.mxu2 %v164_v52  ;;  %328 = vmatmul.f32.gmra.mxu3 %v165_v53 }
  0x4e   :  { %205 = vmatmul.f32.gmra.mxu0 %v162_v54  ;;  %246 = vmatmul.f32.gmra.mxu1 %v163_v55 }
  0x54   :  { %290 = vmatmul.f32.gmra.mxu2 %v168_v56  ;;  %331 = vmatmul.f32.gmra.mxu3 %v169_v57 }
  0x56   :  { %208 = vmatmul.f32.gmra.mxu0 %v166_v58  ;;  %249 = vmatmul.f32.gmra.mxu1 %v167_v59 }
  0x5c   :  { %293 = vmatmul.f32.gmra.mxu2 %v172_v60  ;;  %334 = vmatmul.f32.gmra.mxu3 %v173_v61 }
  0x5e   :  { %211 = vmatmul.f32.gmra.mxu0 %v170_v62  ;;  %252 = vmatmul.f32.gmra.mxu1 %v171_v63 }
  0xa3   :  { %v191_v0 = vpop.f32.mrf.mxu0  ;;  %v232_v1 = vpop.f32.mrf.mxu1 }
  0xa4   :  { %v233_v2 = vadd.f32 %v232_v1, %v191_v0 }
  0xa7   :  { %v273_v3 = vpop.f32.mrf.mxu2  ;;  %v314_v4 = vpop.f32.mrf.mxu3 }
  0xa8   :  { %v274_v5 = vadd.f32 %v273_v3, %v233_v2 }
  0xaa   :  { %v315_v6 = vadd.f32 %v314_v4, %v274_v5 }
  0xab   :  { %v194_v7 = vpop.f32.mrf.mxu0  ;;  %v235_v8 = vpop.f32.mrf.mxu1 }
  0xac   :  { %354 = vadd.xlane.f32.xlu0 %v315_v6  ;;  %v236_v9 = vadd.f32 %v235_v8, %v194_v7  ;;  %v379_v10 = vmul.f32 %v315_v6, %v315_v6 }
  0xae   :  { %387 = vadd.xlane.f32.xlu2 %v379_v10 }
  0xaf   :  { %v276_v11 = vpop.f32.mrf.mxu2  ;;  %v317_v12 = vpop.f32.mrf.mxu3 }
  0xb0   :  { %v277_v13 = vadd.f32 %v276_v11, %v236_v9 }
  0xb2   :  { %v318_v14 = vadd.f32 %v317_v12, %v277_v13 }
  0xb3   :  { %v197_v15 = vpop.f32.mrf.mxu0  ;;  %v238_v16 = vpop.f32.mrf.mxu1 }
  0xb4   :  { %v554_v17 = vpack.c.bf16 %v318_v14, %v315_v6  ;;  %356 = vadd.xlane.f32.xlu0 %v318_v14  ;;  %v239_v18 = vadd.f32 %v238_v16, %v197_v15  ;;  %v380_v23 = vmul.f32 %v318_v14, %v318_v14 }
  0xb6   :  { %555 = vst [vmem:[%s900_s2] sm:$0xff] %v554_v17  }
  0xb7   :  { %v279_v19 = vpop.f32.mrf.mxu2  ;;  %v320_v20 = vpop.f32.mrf.mxu3 }
  0xb8   :  { %v280_v21 = vadd.f32 %v279_v19, %v239_v18 }
  0xba   :  { %v321_v22 = vadd.f32 %v320_v20, %v280_v21 }
  0xbb   :  { %v200_v24 = vpop.f32.mrf.mxu0  ;;  %v241_v25 = vpop.f32.mrf.mxu1 }
  0xbc   :  { %389 = vadd.xlane.f32.xlu0 %v380_v23  ;;  %358 = vadd.xlane.f32.xlu1 %v321_v22  ;;  %v242_v26 = vadd.f32 %v241_v25, %v200_v24  ;;  %v381_v31 = vmul.f32 %v321_v22, %v321_v22 }
  0xbf   :  { %v282_v27 = vpop.f32.mrf.mxu2  ;;  %v323_v28 = vpop.f32.mrf.mxu3 }
  0xc0   :  { %v283_v29 = vadd.f32 %v282_v27, %v242_v26 }
  0xc2   :  { %v324_v30 = vadd.f32 %v323_v28, %v283_v29 }
  0xc3   :  { %v203_v32 = vpop.f32.mrf.mxu0  ;;  %v244_v33 = vpop.f32.mrf.mxu1 }
  0xc4   :  { %v559_v34 = vpack.c.bf16 %v324_v30, %v321_v22  ;;  %391 = vadd.xlane.f32.xlu1 %v381_v31  ;;  %v245_v35 = vadd.f32 %v244_v33, %v203_v32  ;;  %v382_v36 = vmul.f32 %v324_v30, %v324_v30 }
  0xc6   :  { %602 = vst [vmem:[%s900_s2 + $0x8] sm:$0xff] %v559_v34   ;;  %393 = vadd.xlane.f32.xlu2 %v382_v36 }
  0xc7   :  { %v285_v37 = vpop.f32.mrf.mxu2  ;;  %v326_v38 = vpop.f32.mrf.mxu3 }
  0xc8   :  { %v286_v39 = vadd.f32 %v285_v37, %v245_v35 }
  0xca   :  { %v327_v40 = vadd.f32 %v326_v38, %v286_v39 }
  0xcb   :  { %v206_v41 = vpop.f32.mrf.mxu0  ;;  %v247_v42 = vpop.f32.mrf.mxu1 }
  0xcc   :  { %360 = vadd.xlane.f32.xlu1 %v324_v30  ;;  %v248_v43 = vadd.f32 %v247_v42, %v206_v41  ;;  %v383_v44 = vmul.f32 %v327_v40, %v327_v40 }
  0xce   :  { %362 = vadd.xlane.f32.xlu2 %v327_v40  ;;  %395 = vadd.xlane.f32.xlu0 %v383_v44 }
  0xcf   :  { %v288_v45 = vpop.f32.mrf.mxu2  ;;  %v329_v46 = vpop.f32.mrf.mxu3 }
  0xd0   :  { %v289_v47 = vadd.f32 %v288_v45, %v248_v43 }
  0xd2   :  { %v330_v48 = vadd.f32 %v329_v46, %v289_v47 }
  0xd3   :  { %v209_v49 = vpop.f32.mrf.mxu0  ;;  %v250_v50 = vpop.f32.mrf.mxu1 }
  0xd4   :  { %v564_v51 = vpack.c.bf16 %v330_v48, %v327_v40  ;;  %v251_v52 = vadd.f32 %v250_v50, %v209_v49  ;;  %v384_v3 = vmul.f32 %v330_v48, %v330_v48 }
  0xd6   :  { %603 = vst [vmem:[%s900_s2 + $0x10] sm:$0xff] %v564_v51   ;;  %364 = vadd.xlane.f32.xlu2 %v330_v48 }
  0xd7   :  { %v291_v53 = vpop.f32.mrf.mxu2  ;;  %v332_v54 = vpop.f32.mrf.mxu3 }
  0xd8   :  { %v292_v55 = vadd.f32 %v291_v53, %v251_v52 }
  0xda   :  { %v333_v56 = vadd.f32 %v332_v54, %v292_v55 }
  0xdb   :  { %v212_v57 = vpop.f32.mrf.mxu0  ;;  %v253_v58 = vpop.f32.mrf.mxu1 }
  0xdc   :  { %366 = vadd.xlane.f32.xlu0 %v333_v56  ;;  %v254_v59 = vadd.f32 %v253_v58, %v212_v57  ;;  %v385_v60 = vmul.f32 %v333_v56, %v333_v56 }
  0xde   :  { %399 = vadd.xlane.f32.xlu2 %v385_v60 }
  0xdf   :  { %v294_v61 = vpop.f32.mrf.mxu2  ;;  %v335_v62 = vpop.f32.mrf.mxu3 }
  0xe0   :  { %v295_v63 = vadd.f32 %v294_v61, %v254_v59 }
  0xe2   :  { %v336_v0 = vadd.f32 %v335_v62, %v295_v63 }
  0xe4   :  { %v569_v1 = vpack.c.bf16 %v336_v0, %v333_v56  ;;  %368 = vadd.xlane.f32.xlu1 %v336_v0  ;;  %v386_v2 = vmul.f32 %v336_v0, %v336_v0 }
  0xe6   :  { %604 = vst [vmem:[%s900_s2 + $0x18] sm:$0xff] %v569_v1   ;;  %401 = vadd.xlane.f32.xlu0 %v386_v2 }
  0xec   :  { %397 = vadd.xlane.f32.xlu1 %v384_v3 }
 0x11f   :  { %v355_v4 = vpop.xlane.xlu0 %354 }
 0x120   :  { %371 = vst.msk [vmem:[%s901_s3] sm:$0xff] %vm370_vm0, %v355_v4 }
 0x121   :  { %v388_v5 = vpop.xlane.xlu2 %387 }
 0x122   :  { %403 = vst.msk [vmem:[%s902_s4] sm:$0xff] %vm370_vm0, %v388_v5 }
 0x127   :  { %v357_v6 = vpop.xlane.xlu0 %356 }
 0x128   :  { %372 = vst.msk [vmem:[%s901_s3 + $0x8] sm:$0xff] %vm370_vm0, %v357_v6 }
 0x12f   :  { %v390_v7 = vpop.xlane.xlu0 %389  ;;  %v359_v8 = vpop.xlane.xlu1 %358 }
 0x130   :  { %404 = vst.msk [vmem:[%s902_s4 + $0x8] sm:$0xff] %vm370_vm0, %v390_v7 }
 0x131   :  { %373 = vst.msk [vmem:[%s901_s3 + $0x10] sm:$0xff] %vm370_vm0, %v359_v8 }
 0x137   :  { %v392_v9 = vpop.xlane.xlu1 %391 }
 0x138   :  { %405 = vst.msk [vmem:[%s902_s4 + $0x10] sm:$0xff] %vm370_vm0, %v392_v9 }
 0x139   :  { %v394_v10 = vpop.xlane.xlu2 %393 }
 0x13a   :  { %406 = vst.msk [vmem:[%s902_s4 + $0x18] sm:$0xff] %vm370_vm0, %v394_v10 }
 0x13f   :  { %v361_v11 = vpop.xlane.xlu1 %360 }
 0x140   :  { %374 = vst.msk [vmem:[%s901_s3 + $0x18] sm:$0xff] %vm370_vm0, %v361_v11 }
 0x141   :  { %v363_v12 = vpop.xlane.xlu2 %362  ;;  %v396_v13 = vpop.xlane.xlu0 %395 }
 0x142   :  { %375 = vst.msk [vmem:[%s901_s3 + $0x20] sm:$0xff] %vm370_vm0, %v363_v12 }
 0x143   :  { %407 = vst.msk [vmem:[%s902_s4 + $0x20] sm:$0xff] %vm370_vm0, %v396_v13 }
 0x149   :  { %v365_v14 = vpop.xlane.xlu2 %364 }
 0x14a   :  { %376 = vst.msk [vmem:[%s901_s3 + $0x28] sm:$0xff] %vm370_vm0, %v365_v14 }
 0x14f   :  { %v367_v15 = vpop.xlane.xlu0 %366 }
 0x150   :  { %377 = vst.msk [vmem:[%s901_s3 + $0x30] sm:$0xff] %vm370_vm0, %v367_v15 }
 0x151   :  { %v400_v16 = vpop.xlane.xlu2 %399 }
 0x152   :  { %409 = vst.msk [vmem:[%s902_s4 + $0x30] sm:$0xff] %vm370_vm0, %v400_v16 }
 0x157   :  { %v369_v17 = vpop.xlane.xlu1 %368 }
 0x158   :  { %378 = vst.msk [vmem:[%s901_s3 + $0x38] sm:$0xff] %vm370_vm0, %v369_v17 }
 0x159   :  { %v402_v18 = vpop.xlane.xlu0 %401 }
 0x15a   :  { %410 = vst.msk [vmem:[%s902_s4 + $0x38] sm:$0xff] %vm370_vm0, %v402_v18 }
 0x15f   :  { %v398_v19 = vpop.xlane.xlu1 %397 }
 0x160   :  { %408 = vst.msk [vmem:[%s902_s4 + $0x28] sm:$0xff] %vm370_vm0, %v398_v19 }

</bundles_post_ra>
